<compile_context>
chip_gen: v5e
topology: v5e:2x2
jax: 0.10.0
libtpu: 0.0.40
codegen_flags: <defaults>
</compile_context>

<pallas_src>
import numpy as np
import jax
import jax.numpy as jnp
from jax.experimental import pallas as pl
from jax.experimental.pallas import tpu as pltpu

# Small demo shapes consistent with the PyTorch module (n_modes <= N//2 + 1).
B, N, C_LHS, F, M, PRE, C_RHS = 2, 16, 2, 16, 4, 32, 1
NI, NF, NP, NO = N * C_LHS, N * F, N * PRE, N * C_RHS

# v6e/v7x lever: feed bf16 operands to the MXU (f32 accumulation via
# preferred_element_type).  Keep False on v5e / for tight f32 validation.
USE_BF16 = False
_MM_DTYPE = jnp.bfloat16 if USE_BF16 else jnp.float32


def _fno_kernel(x_ref, p_ref, bp_ref, a_ref, ba_ref, q_ref, bq_ref,
                o_ref, bo_ref, out_ref):
    def mm(a, b):
        return jnp.dot(a.astype(_MM_DTYPE), b,
                       preferred_element_type=jnp.float32)

    # linear_p as block-diagonal operator: (B, N*C_lhs) @ (N*C_lhs, N*F)
    h = mm(x_ref[...], p_ref[...]) + bp_ref[...]                 # (B, N*F)

    # Three fused Fourier layers: irfft(W_l * rfft(h)) + conv1x1(h), tanh.
    for l in range(3):                                           # unrolled
        h = jnp.tanh(mm(h, a_ref[l]) + ba_ref[l])                # (B, N*F)

    # linear_q -> tanh -> layer_out, again as block-diagonal operators.
    q = jnp.tanh(mm(h, q_ref[...]) + bq_ref[...])                # (B, N*PRE)
    out_ref[...] = mm(q, o_ref[...]) + bo_ref[...]               # (B, N*C_rhs)


def _full_spec(shape):
    rank = len(shape)
    return pl.BlockSpec(shape, lambda i, _r=rank: (0,) * _r)


def fno1d_forward(x, fused):
    (P_op, bp_f, A_op, bA_f, Q_op, bq_f, O_op, bo_f) = fused
    x_flat = x.reshape(B, NI)                      # contiguous, free reshape
    operands = (x_flat, P_op, bp_f, A_op, bA_f, Q_op, bq_f, O_op, bo_f)
    out_flat = pl.pallas_call(
        _fno_kernel,
        out_shape=jax.ShapeDtypeStruct((B, NO), jnp.float32),
        grid=(1,),                                 # single invocation, no per-step overhead
        in_specs=[_full_spec(op.shape) for op in operands],
        out_specs=_full_spec((B, NO)),
        compiler_params=pltpu.CompilerParams(
            dimension_semantics=("arbitrary",)),
    )(*operands)
    return out_flat.reshape(B, N, C_RHS)


def init_raw_params(key):
    """Parameters in the same form as the PyTorch module."""
    ks = jax.random.split(key, 10)
    scale = 1.0 / (F * F)                          # SpectralConv1d scale
    wp = jax.random.normal(ks[0], (C_LHS, F), jnp.float32) * 0.3
    bp = jax.random.normal(ks[1], (F,), jnp.float32) * 0.1
    wr = jax.random.uniform(ks[2], (3, M, F, F), jnp.float32) * scale   # Re, (mode,in,out)
    wi = jax.random.uniform(ks[3], (3, M, F, F), jnp.float32) * scale   # Im
    wc = jax.random.normal(ks[4], (3, F, F), jnp.float32) / np.sqrt(F)  # conv1d k=1 (in,out)
    bc = jax.random.normal(ks[5], (3, F), jnp.float32) * 0.1
    wq = jax.random.normal(ks[6], (F, PRE), jnp.float32) / np.sqrt(F)
    bq = jax.random.normal(ks[7], (PRE,), jnp.float32) * 0.1
    wo = jax.random.normal(ks[8], (PRE, C_RHS), jnp.float32) / np.sqrt(PRE)
    bo = jax.random.normal(ks[9], (C_RHS,), jnp.float32) * 0.1
    return (wp, bp, wr, wi, wc, bc, wq, bq, wo, bo)


def _dft_matrices():
    """Truncated real DFT / inverse DFT matrices (exact rfft/irfft on M modes)."""
    n = jnp.arange(N, dtype=jnp.float32)
    k = jnp.arange(M, dtype=jnp.float32)
    ang = 2.0 * jnp.pi * k[:, None] * n[None, :] / N          # (M, N)
    frt, fit = jnp.cos(ang), -jnp.sin(ang)                    # forward rfft (first M modes)
    ki = jnp.arange(M)
    c = jnp.where(ki == 0, 1.0, 2.0).astype(jnp.float32)
    if N % 2 == 0 and M - 1 >= N // 2:
        c = jnp.where(ki == N // 2, 1.0, c)
    grt = (c[None, :] * jnp.cos(ang.T)) / N                   # (N, M) inverse rfft (real)
    git = (-c[None, :] * jnp.sin(ang.T)) / N                  # (N, M) inverse rfft (imag)
    return frt, fit, grt, git


def build_fused_params(raw):
    """Host-side (pure JAX) pre-fusion of each layer into a dense operator.

    NOTE: at much larger N*F the (N*F)^2 operators must be re-budgeted against
    VMEM (esp. v7x's 64 MiB) or the spectral path kept factorized.
    """
    wp, bp, wr, wi, wc, bc, wq, bq, wo, bo = raw
    frt, fit, grt, git = _dft_matrices()
    eye_n = jnp.eye(N, dtype=jnp.float32)

    # linear_p: block-diagonal (N*C_lhs, N*F).
    P_op = jnp.einsum('nm,co->ncmo', eye_n, wp).reshape(NI, NF)
    bp_f = jnp.tile(bp[None, :], (N, 1)).reshape(1, NF)

    # Fourier layer l: A_l[(m,i),(n,o)] = coeff of h[m,i] in spec[n,o]+conv[n,o].
    A_layers, b_layers = [], []
    for l in range(3):
        spec = (jnp.einsum('nk,km,kio->mino', grt, frt, wr[l])
                - jnp.einsum('nk,km,kio->mino', grt, fit, wi[l])
                + jnp.einsum('nk,km,kio->mino', git, frt, wi[l])
                + jnp.einsum('nk,km,kio->mino', git, fit, wr[l]))
        conv = jnp.einsum('mn,io->mino', eye_n, wc[l])
        A_layers.append((spec + conv).reshape(NF, NF))
        b_layers.append(jnp.tile(bc[l][None, :], (N, 1)).reshape(1, NF))
    A_op = jnp.stack(A_layers)                    # (3, N*F, N*F)
    bA_f = jnp.stack(b_layers)                    # (3, 1, N*F)

    # linear_q and layer_out: block-diagonal operators.
    Q_op = jnp.einsum('nm,op->nomp', eye_n, wq).reshape(NF, NP)
    bq_f = jnp.tile(bq[None, :], (N, 1)).reshape(1, NP)
    O_op = jnp.einsum('nm,pr->npmr', eye_n, wo).reshape(NP, NO)
    bo_f = jnp.tile(bo[None, :], (N, 1)).reshape(1, NO)

    cast = lambda a: a.astype(_MM_DTYPE)
    return (cast(P_op), bp_f, cast(A_op), bA_f, cast(Q_op), bq_f,
            cast(O_op), bo_f)


def reference_forward(x, raw):
    """Pure-JAX reference mirroring the PyTorch forward (uses jnp.fft)."""
    wp, bp, wr, wi, wc, bc, wq, bq, wo, bo = raw
    h = x @ wp + bp                                           # (B, N, F)
    h = jnp.transpose(h, (0, 2, 1))                           # (B, F, N)
    for l in range(3):
        w = (wr[l] + 1j * wi[l]).astype(jnp.complex64)        # (mode, in, out)
        xf = jnp.fft.rfft(h, axis=-1)                         # (B, F, N//2+1)
        y = jnp.einsum('bik,kio->bok', xf[:, :, :M], w)
        yfull = jnp.zeros((B, F, N // 2 + 1), jnp.complex64).at[:, :, :M].set(y)
        spec = jnp.fft.irfft(yfull, n=N, axis=-1)             # (B, F, N)
        conv = jnp.einsum('bin,io->bon', h, wc[l]) + bc[l][None, :, None]
        h = jnp.tanh(spec + conv)
    h = jnp.transpose(h, (0, 2, 1))                           # (B, N, F)
    q = jnp.tanh(h @ wq + bq)
    return q @ wo + bo


if __name__ == "__main__":
    key = jax.random.PRNGKey(0)
    kx, kp = jax.random.split(key)
    x = jax.random.normal(kx, (B, N, C_LHS), jnp.float32)     # (batch, gridpts, n_channels_lhs)
    raw = init_raw_params(kp)
    fused = build_fused_params(raw)

    out = jax.block_until_ready(fno1d_forward(x, fused))
    assert out.shape == (B, N, C_RHS)

    ref = jax.block_until_ready(reference_forward(x, raw))
    tol = dict(atol=5e-2, rtol=5e-2) if USE_BF16 else dict(atol=2e-4, rtol=2e-3)
    np.testing.assert_allclose(np.asarray(out), np.asarray(ref), **tol)
    print("KERNEL_OK")
</pallas_src>

<mosaic_0001>
module attributes {stable_mosaic.version = 11 : i64} {
  func.func @_fno_kernel(%arg0: i32, %arg1: memref<2x32xf32, #tpu.memory_space<vmem>>, %arg2: memref<32x256xf32, #tpu.memory_space<vmem>>, %arg3: memref<1x256xf32, #tpu.memory_space<vmem>>, %arg4: memref<3x256x256xf32, #tpu.memory_space<vmem>>, %arg5: memref<3x1x256xf32, #tpu.memory_space<vmem>>, %arg6: memref<256x512xf32, #tpu.memory_space<vmem>>, %arg7: memref<1x512xf32, #tpu.memory_space<vmem>>, %arg8: memref<512x16xf32, #tpu.memory_space<vmem>>, %arg9: memref<1x16xf32, #tpu.memory_space<vmem>>, %arg10: memref<2x16xf32, #tpu.memory_space<vmem>>) attributes {dimension_semantics = [#tpu.dimension_semantics<arbitrary>], iteration_bounds = array<i64: 1>, scalar_prefetch = 0 : i64, scratch_operands = 0 : i64, tpu.core_type = #tpu.core_type<tc>, window_params = [{pipeline_mode = #tpu.pipeline_mode<synchronous>, transform_indices = @transform_0, window_bounds = array<i64: 2, 32>}, {pipeline_mode = #tpu.pipeline_mode<synchronous>, transform_indices = @transform_1, window_bounds = array<i64: 32, 256>}, {pipeline_mode = #tpu.pipeline_mode<synchronous>, transform_indices = @transform_2, window_bounds = array<i64: 1, 256>}, {pipeline_mode = #tpu.pipeline_mode<synchronous>, transform_indices = @transform_3, window_bounds = array<i64: 3, 256, 256>}, {pipeline_mode = #tpu.pipeline_mode<synchronous>, transform_indices = @transform_4, window_bounds = array<i64: 3, 1, 256>}, {pipeline_mode = #tpu.pipeline_mode<synchronous>, transform_indices = @transform_5, window_bounds = array<i64: 256, 512>}, {pipeline_mode = #tpu.pipeline_mode<synchronous>, transform_indices = @transform_6, window_bounds = array<i64: 1, 512>}, {pipeline_mode = #tpu.pipeline_mode<synchronous>, transform_indices = @transform_7, window_bounds = array<i64: 512, 16>}, {pipeline_mode = #tpu.pipeline_mode<synchronous>, transform_indices = @transform_8, window_bounds = array<i64: 1, 16>}, {pipeline_mode = #tpu.pipeline_mode<synchronous>, transform_indices = @transform_9, window_bounds = array<i64: 2, 16>}]} {
    %c0 = arith.constant 0 : index
    %c0_0 = arith.constant 0 : index
    %0 = vector.load %arg1[%c0, %c0_0] : memref<2x32xf32, #tpu.memory_space<vmem>>, vector<2x32xf32>
    %c0_1 = arith.constant 0 : index
    %c0_2 = arith.constant 0 : index
    %1 = vector.load %arg2[%c0_1, %c0_2] : memref<32x256xf32, #tpu.memory_space<vmem>>, vector<32x256xf32>
    %cst = arith.constant dense<0.000000e+00> : vector<2x256xf32>
    %2 = tpu.matmul %0, %1, %cst {dimension_numbers = #tpu.dot_dimension_numbers<[1], [0], [0], [1], [0, 0, 1, 1], [], []>} : vector<2x32xf32>, vector<32x256xf32>, vector<2x256xf32> -> vector<2x256xf32>
    %c0_3 = arith.constant 0 : index
    %c0_4 = arith.constant 0 : index
    %3 = vector.load %arg3[%c0_3, %c0_4] : memref<1x256xf32, #tpu.memory_space<vmem>>, vector<1x256xf32>
    %4 = vector.broadcast %3 : vector<1x256xf32> to vector<2x256xf32>
    %5 = arith.addf %2, %4 : vector<2x256xf32>
    %c0_5 = arith.constant 0 : index
    %c0_6 = arith.constant 0 : index
    %c0_7 = arith.constant 0 : index
    %6 = vector.load %arg4[%c0_5, %c0_6, %c0_7] : memref<3x256x256xf32, #tpu.memory_space<vmem>>, vector<1x256x256xf32>
    %7 = vector.shape_cast %6 : vector<1x256x256xf32> to vector<256x256xf32>
    %cst_8 = arith.constant dense<0.000000e+00> : vector<2x256xf32>
    %8 = tpu.matmul %5, %7, %cst_8 {dimension_numbers = #tpu.dot_dimension_numbers<[1], [0], [0], [1], [0, 0, 1, 1], [], []>} : vector<2x256xf32>, vector<256x256xf32>, vector<2x256xf32> -> vector<2x256xf32>
    %c0_9 = arith.constant 0 : index
    %c0_10 = arith.constant 0 : index
    %c0_11 = arith.constant 0 : index
    %9 = vector.load %arg5[%c0_9, %c0_10, %c0_11] : memref<3x1x256xf32, #tpu.memory_space<vmem>>, vector<1x1x256xf32>
    %10 = vector.shape_cast %9 : vector<1x1x256xf32> to vector<1x256xf32>
    %11 = vector.broadcast %10 : vector<1x256xf32> to vector<2x256xf32>
    %12 = arith.addf %8, %11 : vector<2x256xf32>
    %13 = math.tanh %12 : vector<2x256xf32>
    %c1 = arith.constant 1 : index
    %c0_12 = arith.constant 0 : index
    %c0_13 = arith.constant 0 : index
    %14 = vector.load %arg4[%c1, %c0_12, %c0_13] : memref<3x256x256xf32, #tpu.memory_space<vmem>>, vector<1x256x256xf32>
    %15 = vector.shape_cast %14 : vector<1x256x256xf32> to vector<256x256xf32>
    %cst_14 = arith.constant dense<0.000000e+00> : vector<2x256xf32>
    %16 = tpu.matmul %13, %15, %cst_14 {dimension_numbers = #tpu.dot_dimension_numbers<[1], [0], [0], [1], [0, 0, 1, 1], [], []>} : vector<2x256xf32>, vector<256x256xf32>, vector<2x256xf32> -> vector<2x256xf32>
    %c1_15 = arith.constant 1 : index
    %c0_16 = arith.constant 0 : index
    %c0_17 = arith.constant 0 : index
    %17 = vector.load %arg5[%c1_15, %c0_16, %c0_17] : memref<3x1x256xf32, #tpu.memory_space<vmem>>, vector<1x1x256xf32>
    %18 = vector.shape_cast %17 : vector<1x1x256xf32> to vector<1x256xf32>
    %19 = vector.broadcast %18 : vector<1x256xf32> to vector<2x256xf32>
    %20 = arith.addf %16, %19 : vector<2x256xf32>
    %21 = math.tanh %20 : vector<2x256xf32>
    %c2 = arith.constant 2 : index
    %c0_18 = arith.constant 0 : index
    %c0_19 = arith.constant 0 : index
    %22 = vector.load %arg4[%c2, %c0_18, %c0_19] : memref<3x256x256xf32, #tpu.memory_space<vmem>>, vector<1x256x256xf32>
    %23 = vector.shape_cast %22 : vector<1x256x256xf32> to vector<256x256xf32>
    %cst_20 = arith.constant dense<0.000000e+00> : vector<2x256xf32>
    %24 = tpu.matmul %21, %23, %cst_20 {dimension_numbers = #tpu.dot_dimension_numbers<[1], [0], [0], [1], [0, 0, 1, 1], [], []>} : vector<2x256xf32>, vector<256x256xf32>, vector<2x256xf32> -> vector<2x256xf32>
    %c2_21 = arith.constant 2 : index
    %c0_22 = arith.constant 0 : index
    %c0_23 = arith.constant 0 : index
    %25 = vector.load %arg5[%c2_21, %c0_22, %c0_23] : memref<3x1x256xf32, #tpu.memory_space<vmem>>, vector<1x1x256xf32>
    %26 = vector.shape_cast %25 : vector<1x1x256xf32> to vector<1x256xf32>
    %27 = vector.broadcast %26 : vector<1x256xf32> to vector<2x256xf32>
    %28 = arith.addf %24, %27 : vector<2x256xf32>
    %29 = math.tanh %28 : vector<2x256xf32>
    %c0_24 = arith.constant 0 : index
    %c0_25 = arith.constant 0 : index
    %30 = vector.load %arg6[%c0_24, %c0_25] : memref<256x512xf32, #tpu.memory_space<vmem>>, vector<256x512xf32>
    %cst_26 = arith.constant dense<0.000000e+00> : vector<2x512xf32>
    %31 = tpu.matmul %29, %30, %cst_26 {dimension_numbers = #tpu.dot_dimension_numbers<[1], [0], [0], [1], [0, 0, 1, 1], [], []>} : vector<2x256xf32>, vector<256x512xf32>, vector<2x512xf32> -> vector<2x512xf32>
    %c0_27 = arith.constant 0 : index
    %c0_28 = arith.constant 0 : index
    %32 = vector.load %arg7[%c0_27, %c0_28] : memref<1x512xf32, #tpu.memory_space<vmem>>, vector<1x512xf32>
    %33 = vector.broadcast %32 : vector<1x512xf32> to vector<2x512xf32>
    %34 = arith.addf %31, %33 : vector<2x512xf32>
    %35 = math.tanh %34 : vector<2x512xf32>
    %c0_29 = arith.constant 0 : index
    %c0_30 = arith.constant 0 : index
    %36 = vector.load %arg8[%c0_29, %c0_30] : memref<512x16xf32, #tpu.memory_space<vmem>>, vector<512x16xf32>
    %cst_31 = arith.constant dense<0.000000e+00> : vector<2x16xf32>
    %37 = tpu.matmul %35, %36, %cst_31 {dimension_numbers = #tpu.dot_dimension_numbers<[1], [0], [0], [1], [0, 0, 1, 1], [], []>} : vector<2x512xf32>, vector<512x16xf32>, vector<2x16xf32> -> vector<2x16xf32>
    %c0_32 = arith.constant 0 : index
    %c0_33 = arith.constant 0 : index
    %38 = vector.load %arg9[%c0_32, %c0_33] : memref<1x16xf32, #tpu.memory_space<vmem>>, vector<1x16xf32>
    %39 = vector.broadcast %38 : vector<1x16xf32> to vector<2x16xf32>
    %40 = arith.addf %37, %39 : vector<2x16xf32>
    %c0_34 = arith.constant 0 : index
    %c0_35 = arith.constant 0 : index
    %41 = vector.load %arg10[%c0_34, %c0_35] : memref<2x16xf32, #tpu.memory_space<vmem>>, vector<2x16xf32>
    tpu.vector_store %arg10[%c0_34, %c0_35], %40 {strides = array<i32>} : memref<2x16xf32, #tpu.memory_space<vmem>>, vector<2x16xf32>,
    return
  }
  func.func @transform_0(%arg0: i32) -> (i32, i32) {
    %c0_i32 = arith.constant 0 : i32
    %c0_i32_0 = arith.constant 0 : i32
    %c0_i32_1 = arith.constant 0 : i32
    return %c0_i32, %c0_i32_0 : i32, i32
  }
  func.func @transform_1(%arg0: i32) -> (i32, i32) {
    %c0_i32 = arith.constant 0 : i32
    %c0_i32_0 = arith.constant 0 : i32
    %c0_i32_1 = arith.constant 0 : i32
    return %c0_i32, %c0_i32_0 : i32, i32
  }
  func.func @transform_2(%arg0: i32) -> (i32, i32) {
    %c0_i32 = arith.constant 0 : i32
    %c0_i32_0 = arith.constant 0 : i32
    %c0_i32_1 = arith.constant 0 : i32
    return %c0_i32, %c0_i32_0 : i32, i32
  }
  func.func @transform_3(%arg0: i32) -> (i32, i32, i32) {
    %c0_i32 = arith.constant 0 : i32
    %c0_i32_0 = arith.constant 0 : i32
    %c0_i32_1 = arith.constant 0 : i32
    %c0_i32_2 = arith.constant 0 : i32
    return %c0_i32, %c0_i32_0, %c0_i32_1 : i32, i32, i32
  }
  func.func @transform_4(%arg0: i32) -> (i32, i32, i32) {
    %c0_i32 = arith.constant 0 : i32
    %c0_i32_0 = arith.constant 0 : i32
    %c0_i32_1 = arith.constant 0 : i32
    %c0_i32_2 = arith.constant 0 : i32
    return %c0_i32, %c0_i32_0, %c0_i32_1 : i32, i32, i32
  }
  func.func @transform_5(%arg0: i32) -> (i32, i32) {
    %c0_i32 = arith.constant 0 : i32
    %c0_i32_0 = arith.constant 0 : i32
    %c0_i32_1 = arith.constant 0 : i32
    return %c0_i32, %c0_i32_0 : i32, i32
  }
  func.func @transform_6(%arg0: i32) -> (i32, i32) {
    %c0_i32 = arith.constant 0 : i32
    %c0_i32_0 = arith.constant 0 : i32
    %c0_i32_1 = arith.constant 0 : i32
    return %c0_i32, %c0_i32_0 : i32, i32
  }
  func.func @transform_7(%arg0: i32) -> (i32, i32) {
    %c0_i32 = arith.constant 0 : i32
    %c0_i32_0 = arith.constant 0 : i32
    %c0_i32_1 = arith.constant 0 : i32
    return %c0_i32, %c0_i32_0 : i32, i32
  }
  func.func @transform_8(%arg0: i32) -> (i32, i32) {
    %c0_i32 = arith.constant 0 : i32
    %c0_i32_0 = arith.constant 0 : i32
    %c0_i32_1 = arith.constant 0 : i32
    return %c0_i32, %c0_i32_0 : i32, i32
  }
  func.func @transform_9(%arg0: i32) -> (i32, i32) {
    %c0_i32 = arith.constant 0 : i32
    %c0_i32_0 = arith.constant 0 : i32
    %c0_i32_1 = arith.constant 0 : i32
    return %c0_i32, %c0_i32_0 : i32, i32
  }
}

</mosaic_0001>

<bundles_post_ra>
// kernel: tpu_custom_call.1
= control target key start
LH: loop header
LB: loop body
LE: loop exit
PB: predicated region body
PF: predicated region fallthrough
CT: control target
= control target key end

     0   :  { %14 = vsyncpa [#allocation3], 0  ;;  %s1467_s0 = inlined_call_operand.vmem [shape: f32[2,32], index: 0, kind: input, shape index: {}]   ;;  %s1468_s1 = inlined_call_operand.vmem [shape: f32[32,256], index: 1, kind: input, shape index: {}]   ;;  %s1469_s2 = inlined_call_operand.vmem [shape: f32[1,256], index: 2, kind: input, shape index: {}]   ;;  %s1470_s3 = inlined_call_operand.hbm [shape: f32[3,256,256], index: 3, kind: input, shape index: {}]   ;;  %s1471_s4 = inlined_call_operand.vmem [shape: f32[3,1,256], index: 4, kind: input, shape index: {}]   ;;  %s1472_s5 = inlined_call_operand.hbm [shape: f32[256,512], index: 5, kind: input, shape index: {}]   ;;  %s1473_s6 = inlined_call_operand.vmem [shape: f32[1,512], index: 6, kind: input, shape index: {}]   ;;  %s1474_s7 = inlined_call_operand.vmem [shape: f32[512,16], index: 7, kind: input, shape index: {}]   ;;  %s1475_s8 = inlined_call_operand.vmem [shape: f32[1,16], index: 8, kind: input, shape index: {}]   ;;  %s1476_s9 = inlined_call_operand.hbm [shape: f32[2,16], index: 9, kind: output, shape index: {}]  }
   0x1   :  { %15 = vsyncpa [#allocation6], 0 }
   0x2   :  { %16 = vsyncpa [#allocation4], 0  ;;  %s27_s11 = sshll.u32 %s1470_s3, 4  ;;  %s1164_s12 = smov [#allocation2]   ;;  %s28_s11 = int_to_ptr.hbm [resolvable:$true] %s27_s11 }
   0x3   :  { %s29_s13 = sshll.u32 %s1164_s12, 4  ;;  %s42_s16 = sshll.u32 %s1472_s5, 4  ;;  %s30_s13 = int_to_ptr.vmem [resolvable:$true] %s29_s13  ;;  %s43_s16 = int_to_ptr.hbm [resolvable:$true] %s42_s16 }
   0x4   :  { %s1165_s17 = smov 256   ;;  %s1166_s18 = smov 16  }
   0x5   :  { %35 = dma.hbm_to_vmem [thread:$0]  %s28_s11, 24576, %s30_s13, [#allocation3], %s1165_s17, %s1165_s17, %s1166_s18  }
   0x6   :  { %s1167_s19 = smov [#allocation5]   ;;  %s1168_s21 = smov 512  }
   0x7   :  { %s44_s20 = sshll.u32 %s1167_s19, 4  ;;  %s1169_s22 = smov 32   ;;  %s45_s20 = int_to_ptr.vmem [resolvable:$true] %s44_s20 }
   0x8   :  { %50 = dma.hbm_to_vmem [thread:$0]  %s43_s16, 16384, %s45_s20, [#allocation6], %s1168_s21, %s1168_s21, %s1169_s22  }
   0x9   :  { %1158 = dma.done.wait [#allocation3], 24576  }
   0xa   :  { %1159 = vsyncadd [#allocation3], 4294942720 }
   0xb   :  { %1160 = dma.done.wait [#allocation6], 16384  }
   0xc   :  { %1161 = vsyncadd [#allocation6], 4294950912  ;;  %v72_v0 = vld [vmem:[%s1468_s1 + $0x30] sm:$0xff]  ;;  %v70_v1 = vld [vmem:[%s1468_s1 + $0x20] sm:$0xff]  ;;  %vm80_vm0 = vcmask 261120   ;;  %s1170_s18 = smov [#allocation7]  }
   0xd   :  { %v73_v2 = vld [vmem:[%s1468_s1 + $0x38] sm:$0xff]  ;;  %96 = vmatpush.msra.mxu0 %v72_v0  ;;  %v71_v3 = vld [vmem:[%s1468_s1 + $0x28] sm:$0xff]  ;;  %v68_v4 = vld [vmem:[%s1468_s1 + $0x10] sm:$0xff]  ;;  %s1041_s19 = sshll.u32 %s1170_s18, 4  ;;  %s1043_s22 = sshll.u32 %s1476_s9, 4  ;;  %vm1034_vm1 = vcmask 123904   ;;  %s1042_s19 = int_to_ptr.vmem [resolvable:$true] %s1041_s19  ;;  %s1044_s22 = int_to_ptr.hbm [resolvable:$true] %s1043_s22 }
   0xe   :  { %116 = vmatpush.msra.mxu1 %v73_v2  ;;  %v69_v5 = vld [vmem:[%s1468_s1 + $0x18] sm:$0xff]  ;;  %v154_v6 = vld [vmem:[#allocation2 + $0xf0] sm:$0xff]  ;;  %v152_v7 = vld [vmem:[#allocation2 + $0xe0] sm:$0xff] }
   0xf   :  { %97 = vmatpush.msra.mxu0 %v70_v1  ;;  %v66_v8 = vld [vmem:[%s1468_s1] sm:$0xff]  ;;  %v67_v9 = vld [vmem:[%s1468_s1 + $0x8] sm:$0xff]  ;;  %194 = vmatpush.msra.mxu2 %v154_v6  ;;  %v186_v10 = vld [vmem:[#allocation2 + $0x1f0] sm:$0xff] }
  0x10   :  { %117 = vmatpush.msra.mxu1 %v71_v3  ;;  %v65_v11 = vld [vmem:[%s1467_s0] sm:$0x3]  ;;  %v155_v12 = vld [vmem:[#allocation2 + $0xf8] sm:$0xff]  ;;  %214 = vmatpush.msra.mxu3 %v186_v10  ;;  %v150_v14 = vld [vmem:[#allocation2 + $0xd0] sm:$0xff] }
  0x11   :  { %98 = vmatpush.msra.mxu0 %v68_v4  ;;  %195 = vmatpush.msra.mxu2 %v152_v7  ;;  %v187_v13 = vld [vmem:[#allocation2 + $0x1f8] sm:$0xff]  ;;  %v184_v15 = vld [vmem:[#allocation2 + $0x1e0] sm:$0xff]  ;;  %v153_v16 = vld [vmem:[#allocation2 + $0xe8] sm:$0xff] }
  0x12   :  { %118 = vmatpush.msra.mxu1 %v69_v5  ;;  %v185_v17 = vld [vmem:[#allocation2 + $0x1e8] sm:$0xff]  ;;  %v148_v18 = vld [vmem:[#allocation2 + $0xc0] sm:$0xff]  ;;  %v182_v19 = vld [vmem:[#allocation2 + $0x1d0] sm:$0xff]  ;;  %215 = vmatpush.msra.mxu3 %v184_v15 }
  0x13   :  { %99 = vmatpush.msra.mxu0 %v66_v8  ;;  %196 = vmatpush.msra.mxu2 %v150_v14  ;;  %v151_v20 = vld [vmem:[#allocation2 + $0xd8] sm:$0xff]  ;;  %v146_v22 = vld [vmem:[#allocation2 + $0xb0] sm:$0xff]  ;;  %v180_v23 = vld [vmem:[#allocation2 + $0x1c0] sm:$0xff] }
  0x14   :  { %119 = vmatpush.msra.mxu1 %v67_v9  ;;  %1054 = vmatmul.msk.f32.vlgmr.msra.gmra.mxu0 %vm80_vm0, %v65_v11  ;;  %v183_v21 = vld [vmem:[#allocation2 + $0x1d8] sm:$0xff]  ;;  %v149_v24 = vld [vmem:[#allocation2 + $0xc8] sm:$0xff]  ;;  %v144_v26 = vld [vmem:[#allocation2 + $0xa0] sm:$0xff] }
  0x15   :  { %1055 = vmatmul.msk.f32.vlgmr.msra.gmra.mxu1 %vm80_vm0, %v65_v11  ;;  %234 = vmatpush.msrb.mxu0 %v155_v12  ;;  %v181_v25 = vld [vmem:[#allocation2 + $0x1c8] sm:$0xff]  ;;  %v178_v27 = vld [vmem:[#allocation2 + $0x1b0] sm:$0xff]  ;;  %v147_v28 = vld [vmem:[#allocation2 + $0xb8] sm:$0xff] }
  0x16   :  { %254 = vmatpush.msrb.mxu1 %v187_v13  ;;  %197 = vmatpush.msra.mxu2 %v148_v18  ;;  %v179_v29 = vld [vmem:[#allocation2 + $0x1b8] sm:$0xff]  ;;  %v142_v30 = vld [vmem:[#allocation2 + $0x90] sm:$0xff]  ;;  %v176_v31 = vld [vmem:[#allocation2 + $0x1a0] sm:$0xff] }
  0x17   :  { %235 = vmatpush.msrb.mxu0 %v153_v16  ;;  %216 = vmatpush.msra.mxu3 %v182_v19  ;;  %v145_v32 = vld [vmem:[#allocation2 + $0xa8] sm:$0xff]  ;;  %v140_v34 = vld [vmem:[#allocation2 + $0x80] sm:$0xff]  ;;  %v174_v35 = vld [vmem:[#allocation2 + $0x190] sm:$0xff] }
  0x18   :  { %255 = vmatpush.msrb.mxu1 %v185_v17  ;;  %198 = vmatpush.msra.mxu2 %v146_v22  ;;  %v177_v33 = vld [vmem:[#allocation2 + $0x1a8] sm:$0xff]  ;;  %v143_v36 = vld [vmem:[#allocation2 + $0x98] sm:$0xff]  ;;  %v138_v38 = vld [vmem:[#allocation2 + $0x70] sm:$0xff] }
  0x19   :  { %236 = vmatpush.msrb.mxu0 %v151_v20  ;;  %217 = vmatpush.msra.mxu3 %v180_v23  ;;  %v175_v37 = vld [vmem:[#allocation2 + $0x198] sm:$0xff]  ;;  %v172_v39 = vld [vmem:[#allocation2 + $0x180] sm:$0xff]  ;;  %v141_v40 = vld [vmem:[#allocation2 + $0x88] sm:$0xff] }
  0x1a   :  { %256 = vmatpush.msrb.mxu1 %v183_v21  ;;  %199 = vmatpush.msra.mxu2 %v144_v26  ;;  %v173_v41 = vld [vmem:[#allocation2 + $0x188] sm:$0xff]  ;;  %v136_v42 = vld [vmem:[#allocation2 + $0x60] sm:$0xff]  ;;  %v170_v43 = vld [vmem:[#allocation2 + $0x170] sm:$0xff] }
  0x1b   :  { %237 = vmatpush.msrb.mxu0 %v149_v24  ;;  %218 = vmatpush.msra.mxu3 %v178_v27  ;;  %v139_v44 = vld [vmem:[#allocation2 + $0x78] sm:$0xff]  ;;  %v134_v46 = vld [vmem:[#allocation2 + $0x50] sm:$0xff]  ;;  %v168_v47 = vld [vmem:[#allocation2 + $0x160] sm:$0xff] }
  0x1c   :  { %257 = vmatpush.msrb.mxu1 %v181_v25  ;;  %200 = vmatpush.msra.mxu2 %v142_v30  ;;  %v171_v45 = vld [vmem:[#allocation2 + $0x178] sm:$0xff]  ;;  %v137_v48 = vld [vmem:[#allocation2 + $0x68] sm:$0xff]  ;;  %v132_v50 = vld [vmem:[#allocation2 + $0x40] sm:$0xff] }
  0x1d   :  { %238 = vmatpush.msrb.mxu0 %v147_v28  ;;  %219 = vmatpush.msra.mxu3 %v176_v31  ;;  %v169_v49 = vld [vmem:[#allocation2 + $0x168] sm:$0xff]  ;;  %v166_v51 = vld [vmem:[#allocation2 + $0x150] sm:$0xff]  ;;  %v135_v52 = vld [vmem:[#allocation2 + $0x58] sm:$0xff] }
  0x1e   :  { %258 = vmatpush.msrb.mxu1 %v179_v29  ;;  %201 = vmatpush.msra.mxu2 %v140_v34  ;;  %v167_v53 = vld [vmem:[#allocation2 + $0x158] sm:$0xff]  ;;  %v130_v54 = vld [vmem:[#allocation2 + $0x30] sm:$0xff]  ;;  %v164_v55 = vld [vmem:[#allocation2 + $0x140] sm:$0xff] }
  0x1f   :  { %239 = vmatpush.msrb.mxu0 %v145_v32  ;;  %220 = vmatpush.msra.mxu3 %v174_v35  ;;  %v133_v56 = vld [vmem:[#allocation2 + $0x48] sm:$0xff]  ;;  %v128_v58 = vld [vmem:[#allocation2 + $0x20] sm:$0xff]  ;;  %v162_v59 = vld [vmem:[#allocation2 + $0x130] sm:$0xff] }
  0x20   :  { %259 = vmatpush.msrb.mxu1 %v177_v33  ;;  %202 = vmatpush.msra.mxu2 %v138_v38  ;;  %v165_v57 = vld [vmem:[#allocation2 + $0x148] sm:$0xff]  ;;  %v131_v60 = vld [vmem:[#allocation2 + $0x38] sm:$0xff]  ;;  %v126_v63 = vld [vmem:[#allocation2 + $0x10] sm:$0xff] }
  0x21   :  { %240 = vmatpush.msrb.mxu0 %v143_v36  ;;  %221 = vmatpush.msra.mxu3 %v172_v39  ;;  %v163_v61 = vld [vmem:[#allocation2 + $0x138] sm:$0xff]  ;;  %v129_v62 = vld [vmem:[#allocation2 + $0x28] sm:$0xff]  ;;  %v160_v0 = vld [vmem:[#allocation2 + $0x120] sm:$0xff] }
  0x22   :  { %260 = vmatpush.msrb.mxu1 %v175_v37  ;;  %203 = vmatpush.msra.mxu2 %v136_v42  ;;  %v127_v1 = vld [vmem:[#allocation2 + $0x18] sm:$0xff]  ;;  %v161_v2 = vld [vmem:[#allocation2 + $0x128] sm:$0xff]  ;;  %v124_v3 = vld [vmem:[#allocation2] sm:$0xff] }
  0x23   :  { %241 = vmatpush.msrb.mxu0 %v141_v40  ;;  %222 = vmatpush.msra.mxu3 %v170_v43  ;;  %v158_v4 = vld [vmem:[#allocation2 + $0x110] sm:$0xff]  ;;  %v125_v5 = vld [vmem:[#allocation2 + $0x8] sm:$0xff]  ;;  %v159_v6 = vld [vmem:[#allocation2 + $0x118] sm:$0xff] }
  0x24   :  { %261 = vmatpush.msrb.mxu1 %v173_v41  ;;  %204 = vmatpush.msra.mxu2 %v134_v46  ;;  %v156_v7 = vld [vmem:[#allocation2 + $0x100] sm:$0xff]  ;;  %v157_v8 = vld [vmem:[#allocation2 + $0x108] sm:$0xff]  ;;  %v339_v9 = vld [vmem:[#allocation2 + $0x3f0] sm:$0xff] }
  0x25   :  { %242 = vmatpush.msrb.mxu0 %v139_v44  ;;  %223 = vmatpush.msra.mxu3 %v168_v47  ;;  %v340_v10 = vld [vmem:[#allocation2 + $0x3f8] sm:$0xff]  ;;  %v337_v11 = vld [vmem:[#allocation2 + $0x3e0] sm:$0xff]  ;;  %v338_v12 = vld [vmem:[#allocation2 + $0x3e8] sm:$0xff] }
  0x26   :  { %262 = vmatpush.msrb.mxu1 %v171_v45  ;;  %205 = vmatpush.msra.mxu2 %v132_v50  ;;  %v335_v13 = vld [vmem:[#allocation2 + $0x3d0] sm:$0xff]  ;;  %v308_v15 = vld [vmem:[#allocation2 + $0x2f8] sm:$0xff]  ;;  %v305_v17 = vld [vmem:[#allocation2 + $0x2e0] sm:$0xff] }
  0x27   :  { %243 = vmatpush.msrb.mxu0 %v137_v48  ;;  %224 = vmatpush.msra.mxu3 %v166_v51  ;;  %v307_v14 = vld [vmem:[#allocation2 + $0x2f0] sm:$0xff]  ;;  %v336_v16 = vld [vmem:[#allocation2 + $0x3d8] sm:$0xff]  ;;  %v333_v18 = vld [vmem:[#allocation2 + $0x3c0] sm:$0xff] }
  0x28   :  { %263 = vmatpush.msrb.mxu1 %v169_v49  ;;  %206 = vmatpush.msra.mxu2 %v130_v54  ;;  %v306_v19 = vld [vmem:[#allocation2 + $0x2e8] sm:$0xff]  ;;  %v303_v20 = vld [vmem:[#allocation2 + $0x2d0] sm:$0xff]  ;;  %v304_v22 = vld [vmem:[#allocation2 + $0x2d8] sm:$0xff] }
  0x29   :  { %244 = vmatpush.msrb.mxu0 %v135_v52  ;;  %225 = vmatpush.msra.mxu3 %v164_v55  ;;  %v334_v21 = vld [vmem:[#allocation2 + $0x3c8] sm:$0xff]  ;;  %v331_v23 = vld [vmem:[#allocation2 + $0x3b0] sm:$0xff]  ;;  %v301_v24 = vld [vmem:[#allocation2 + $0x2c0] sm:$0xff] }
  0x2a   :  { %264 = vmatpush.msrb.mxu1 %v167_v53  ;;  %207 = vmatpush.msra.mxu2 %v128_v58  ;;  %v332_v25 = vld [vmem:[#allocation2 + $0x3b8] sm:$0xff]  ;;  %v302_v26 = vld [vmem:[#allocation2 + $0x2c8] sm:$0xff]  ;;  %v329_v27 = vld [vmem:[#allocation2 + $0x3a0] sm:$0xff] }
  0x2b   :  { %245 = vmatpush.msrb.mxu0 %v133_v56  ;;  %226 = vmatpush.msra.mxu3 %v162_v59  ;;  %v299_v28 = vld [vmem:[#allocation2 + $0x2b0] sm:$0xff]  ;;  %v330_v29 = vld [vmem:[#allocation2 + $0x3a8] sm:$0xff]  ;;  %v300_v30 = vld [vmem:[#allocation2 + $0x2b8] sm:$0xff] }
  0x2c   :  { %265 = vmatpush.msrb.mxu1 %v165_v57  ;;  %208 = vmatpush.msra.mxu2 %v126_v63  ;;  %v327_v31 = vld [vmem:[#allocation2 + $0x390] sm:$0xff]  ;;  %v297_v32 = vld [vmem:[#allocation2 + $0x2a0] sm:$0xff]  ;;  %v328_v33 = vld [vmem:[#allocation2 + $0x398] sm:$0xff] }
  0x2d   :  { %246 = vmatpush.msrb.mxu0 %v131_v60  ;;  %227 = vmatpush.msra.mxu3 %v160_v0  ;;  %v298_v34 = vld [vmem:[#allocation2 + $0x2a8] sm:$0xff]  ;;  %v325_v35 = vld [vmem:[#allocation2 + $0x380] sm:$0xff]  ;;  %v295_v36 = vld [vmem:[#allocation2 + $0x290] sm:$0xff] }
  0x2e   :  { %266 = vmatpush.msrb.mxu1 %v163_v61  ;;  %209 = vmatpush.msra.mxu2 %v124_v3  ;;  %v326_v37 = vld [vmem:[#allocation2 + $0x388] sm:$0xff]  ;;  %v296_v38 = vld [vmem:[#allocation2 + $0x298] sm:$0xff]  ;;  %v323_v39 = vld [vmem:[#allocation2 + $0x370] sm:$0xff] }
  0x2f   :  { %247 = vmatpush.msrb.mxu0 %v129_v62  ;;  %228 = vmatpush.msra.mxu3 %v158_v4  ;;  %v324_v40 = vld [vmem:[#allocation2 + $0x378] sm:$0xff]  ;;  %v321_v41 = vld [vmem:[#allocation2 + $0x360] sm:$0xff]  ;;  %v322_v42 = vld [vmem:[#allocation2 + $0x368] sm:$0xff] }
  0x30   :  { %267 = vmatpush.msrb.mxu1 %v161_v2  ;;  %348 = vmatpush.msrb.mxu2 %v307_v14  ;;  %v74_v43 = vld [vmem:[%s1469_s2] sm:$0x3]  ;;  %v319_v51 = vld [vmem:[#allocation2 + $0x350] sm:$0xff]  ;;  %v294_v52 = vld [vmem:[#allocation2 + $0x288] sm:$0xff] }
  0x31   :  { %248 = vmatpush.msrb.mxu0 %v127_v1  ;;  %229 = vmatpush.msra.mxu3 %v156_v7  ;;  %v76_v44 = vperm.slane %v74_v43, 0  ;;  %v77_v45 = vperm.slane %v74_v43, 1  ;;  %v293_v50 = vld [vmem:[#allocation2 + $0x280] sm:$0xff]  ;;  %v320_v53 = vld [vmem:[#allocation2 + $0x358] sm:$0xff]  ;;  %v291_v54 = vld [vmem:[#allocation2 + $0x270] sm:$0xff] }
  0x32   :  { %268 = vmatpush.msrb.mxu1 %v159_v6  ;;  %349 = vmatpush.msrb.mxu2 %v305_v17  ;;  %v317_v55 = vld [vmem:[#allocation2 + $0x340] sm:$0xff]  ;;  %v292_v56 = vld [vmem:[#allocation2 + $0x278] sm:$0xff]  ;;  %v318_v57 = vld [vmem:[#allocation2 + $0x348] sm:$0xff] }
  0x33   :  { %249 = vmatpush.msrb.mxu0 %v125_v5  ;;  %368 = vmatpush.msrb.mxu3 %v339_v9  ;;  %v289_v58 = vld [vmem:[#allocation2 + $0x260] sm:$0xff]  ;;  %v315_v59 = vld [vmem:[#allocation2 + $0x330] sm:$0xff]  ;;  %v290_v60 = vld [vmem:[#allocation2 + $0x268] sm:$0xff] }
  0x34   :  { %269 = vmatpush.msrb.mxu1 %v157_v8  ;;  %350 = vmatpush.msrb.mxu2 %v303_v20  ;;  %v316_v61 = vld [vmem:[#allocation2 + $0x338] sm:$0xff]  ;;  %v287_v62 = vld [vmem:[#allocation2 + $0x250] sm:$0xff]  ;;  %v313_v63 = vld [vmem:[#allocation2 + $0x320] sm:$0xff] }
  0x35   :  { %369 = vmatpush.msrb.mxu3 %v337_v11  ;;  %388 = vmatpush.msra.mxu0 %v308_v15  ;;  %v288_v0 = vld [vmem:[#allocation2 + $0x258] sm:$0xff]  ;;  %v314_v1 = vld [vmem:[#allocation2 + $0x328] sm:$0xff]  ;;  %v285_v2 = vld [vmem:[#allocation2 + $0x240] sm:$0xff] }
  0x36   :  { %408 = vmatpush.msra.mxu1 %v340_v10  ;;  %351 = vmatpush.msrb.mxu2 %v301_v24  ;;  %v311_v3 = vld [vmem:[#allocation2 + $0x310] sm:$0xff]  ;;  %v286_v4 = vld [vmem:[#allocation2 + $0x248] sm:$0xff]  ;;  %v312_v5 = vld [vmem:[#allocation2 + $0x318] sm:$0xff] }
  0x37   :  { %370 = vmatpush.msrb.mxu3 %v335_v13  ;;  %389 = vmatpush.msra.mxu0 %v306_v19  ;;  %v283_v6 = vld [vmem:[#allocation2 + $0x230] sm:$0xff]  ;;  %v309_v7 = vld [vmem:[#allocation2 + $0x300] sm:$0xff]  ;;  %v284_v8 = vld [vmem:[#allocation2 + $0x238] sm:$0xff] }
  0x38   :  { %409 = vmatpush.msra.mxu1 %v338_v12  ;;  %352 = vmatpush.msrb.mxu2 %v299_v28  ;;  %v310_v9 = vld [vmem:[#allocation2 + $0x308] sm:$0xff]  ;;  %v281_v10 = vld [vmem:[#allocation2 + $0x220] sm:$0xff]  ;;  %v279_v12 = vld [vmem:[#allocation2 + $0x210] sm:$0xff] }
  0x39   :  { %371 = vmatpush.msrb.mxu3 %v333_v18  ;;  %390 = vmatpush.msra.mxu0 %v304_v22  ;;  %v282_v11 = vld [vmem:[#allocation2 + $0x228] sm:$0xff]  ;;  %v280_v13 = vld [vmem:[#allocation2 + $0x218] sm:$0xff]  ;;  %v277_v14 = vld [vmem:[#allocation2 + $0x200] sm:$0xff] }
  0x3a   :  { %410 = vmatpush.msra.mxu1 %v336_v16  ;;  %353 = vmatpush.msrb.mxu2 %v297_v32  ;;  %v278_v15 = vld [vmem:[#allocation2 + $0x208] sm:$0xff]  ;;  %v493_v16 = vld [vmem:[#allocation2 + $0x5f0] sm:$0xff]  ;;  %v494_v17 = vld [vmem:[#allocation2 + $0x5f8] sm:$0xff] }
  0x3b   :  { %372 = vmatpush.msrb.mxu3 %v331_v23  ;;  %391 = vmatpush.msra.mxu0 %v302_v26  ;;  %v491_v18 = vld [vmem:[#allocation2 + $0x5e0] sm:$0xff]  ;;  %v492_v19 = vld [vmem:[#allocation2 + $0x5e8] sm:$0xff]  ;;  %v489_v20 = vld [vmem:[#allocation2 + $0x5d0] sm:$0xff] }
  0x3c   :  { %411 = vmatpush.msra.mxu1 %v334_v21  ;;  %354 = vmatpush.msrb.mxu2 %v295_v36  ;;  %v490_v21 = vld [vmem:[#allocation2 + $0x5d8] sm:$0xff]  ;;  %v461_v22 = vld [vmem:[#allocation2 + $0x4f0] sm:$0xff]  ;;  %v459_v24 = vld [vmem:[#allocation2 + $0x4e0] sm:$0xff] }
  0x3d   :  { %373 = vmatpush.msrb.mxu3 %v329_v27  ;;  %392 = vmatpush.msra.mxu0 %v300_v30  ;;  %v462_v23 = vld [vmem:[#allocation2 + $0x4f8] sm:$0xff]  ;;  %v488_v26 = vld [vmem:[#allocation2 + $0x5c8] sm:$0xff]  ;;  %v457_v28 = vld [vmem:[#allocation2 + $0x4d0] sm:$0xff] }
  0x3e   :  { %412 = vmatpush.msra.mxu1 %v332_v25  ;;  %355 = vmatpush.msrb.mxu2 %v293_v50  ;;  %v487_v25 = vld [vmem:[#allocation2 + $0x5c0] sm:$0xff]  ;;  %v460_v27 = vld [vmem:[#allocation2 + $0x4e8] sm:$0xff]  ;;  %v485_v30 = vld [vmem:[#allocation2 + $0x5b0] sm:$0xff] }
  0x3f   :  { %374 = vmatpush.msrb.mxu3 %v327_v31  ;;  %393 = vmatpush.msra.mxu0 %v298_v34  ;;  %v486_v31 = vld [vmem:[#allocation2 + $0x5b8] sm:$0xff]  ;;  %v455_v32 = vld [vmem:[#allocation2 + $0x4c0] sm:$0xff]  ;;  %v484_v36 = vld [vmem:[#allocation2 + $0x5a8] sm:$0xff] }
  0x40   :  { %413 = vmatpush.msra.mxu1 %v330_v29  ;;  %356 = vmatpush.msrb.mxu2 %v291_v54  ;;  %v458_v29 = vld [vmem:[#allocation2 + $0x4d8] sm:$0xff]  ;;  %v188_v34 = vld [vmem:[%s1471_s4] sm:$0x3]  ;;  %v480_v54 = vld [vmem:[#allocation2 + $0x588] sm:$0xff] }
  0x41   :  { %375 = vmatpush.msrb.mxu3 %v325_v35  ;;  %394 = vmatpush.msra.mxu0 %v296_v38  ;;  %v483_v35 = vld [vmem:[#allocation2 + $0x5a0] sm:$0xff]  ;;  %v482_v38 = vld [vmem:[#allocation2 + $0x598] sm:$0xff] }
  0x42   :  { %414 = vmatpush.msra.mxu1 %v328_v33  ;;  %357 = vmatpush.msrb.mxu2 %v289_v58  ;;  %v456_v33 = vld [vmem:[#allocation2 + $0x4c8] sm:$0xff]  ;;  %v478_v58 = vld [vmem:[#allocation2 + $0x578] sm:$0xff] }
  0x43   :  { %376 = vmatpush.msrb.mxu3 %v323_v39  ;;  %395 = vmatpush.msra.mxu0 %v294_v52  ;;  %v191_v39 = vperm.slane %v188_v34, 1  ;;  %v479_v52 = vld [vmem:[#allocation2 + $0x580] sm:$0xff] }
  0x44   :  { %415 = vmatpush.msra.mxu1 %v326_v37  ;;  %358 = vmatpush.msrb.mxu2 %v287_v62  ;;  %v481_v37 = vld [vmem:[#allocation2 + $0x590] sm:$0xff]  ;;  %v476_v62 = vld [vmem:[#allocation2 + $0x568] sm:$0xff] }
  0x45   :  { %377 = vmatpush.msrb.mxu3 %v321_v41  ;;  %396 = vmatpush.msra.mxu0 %v292_v56  ;;  %v477_v56 = vld [vmem:[#allocation2 + $0x570] sm:$0xff] }
  0x46   :  { %416 = vmatpush.msra.mxu1 %v324_v40  ;;  %359 = vmatpush.msrb.mxu2 %v285_v2  ;;  %v474_v2 = vld [vmem:[#allocation2 + $0x558] sm:$0xff] }
  0x47   :  { %378 = vmatpush.msrb.mxu3 %v319_v51  ;;  %397 = vmatpush.msra.mxu0 %v290_v60  ;;  %v453_v51 = vld [vmem:[#allocation2 + $0x4b0] sm:$0xff]  ;;  %v475_v60 = vld [vmem:[#allocation2 + $0x560] sm:$0xff] }
  0x48   :  { %417 = vmatpush.msra.mxu1 %v322_v42  ;;  %360 = vmatpush.msrb.mxu2 %v283_v6  ;;  %v472_v6 = vld [vmem:[#allocation2 + $0x548] sm:$0xff] }
  0x49   :  { %379 = vmatpush.msrb.mxu3 %v317_v55  ;;  %398 = vmatpush.msra.mxu0 %v288_v0  ;;  %v451_v55 = vld [vmem:[#allocation2 + $0x4a0] sm:$0xff]  ;;  %v473_v0 = vld [vmem:[#allocation2 + $0x550] sm:$0xff] }
  0x4a   :  { %418 = vmatpush.msra.mxu1 %v320_v53  ;;  %361 = vmatpush.msrb.mxu2 %v281_v10  ;;  %v454_v53 = vld [vmem:[#allocation2 + $0x4b8] sm:$0xff] }
  0x4b   :  { %380 = vmatpush.msrb.mxu3 %v315_v59  ;;  %399 = vmatpush.msra.mxu0 %v286_v4  ;;  %v449_v59 = vld [vmem:[#allocation2 + $0x490] sm:$0xff]  ;;  %v471_v4 = vld [vmem:[#allocation2 + $0x540] sm:$0xff]  ;;  %v470_v10 = vld [vmem:[#allocation2 + $0x538] sm:$0xff] }
  0x4c   :  { %419 = vmatpush.msra.mxu1 %v318_v57  ;;  %362 = vmatpush.msrb.mxu2 %v279_v12  ;;  %v452_v57 = vld [vmem:[#allocation2 + $0x4a8] sm:$0xff]  ;;  %v467_v12 = vld [vmem:[#allocation2 + $0x520] sm:$0xff] }
  0x4d   :  { %381 = vmatpush.msrb.mxu3 %v313_v63  ;;  %400 = vmatpush.msra.mxu0 %v284_v8  ;;  %v447_v63 = vld [vmem:[#allocation2 + $0x480] sm:$0xff]  ;;  %v469_v8 = vld [vmem:[#allocation2 + $0x530] sm:$0xff] }
  0x4e   :  { %420 = vmatpush.msra.mxu1 %v316_v61  ;;  %363 = vmatpush.msrb.mxu2 %v277_v14  ;;  %v450_v61 = vld [vmem:[#allocation2 + $0x498] sm:$0xff]  ;;  %v468_v14 = vld [vmem:[#allocation2 + $0x528] sm:$0xff] }
  0x4f   :  { %382 = vmatpush.msrb.mxu3 %v311_v3  ;;  %401 = vmatpush.msra.mxu0 %v282_v11  ;;  %v445_v3 = vld [vmem:[#allocation2 + $0x470] sm:$0xff] }
  0x50   :  { %421 = vmatpush.msra.mxu1 %v314_v1  ;;  %v448_v1 = vld [vmem:[#allocation2 + $0x488] sm:$0xff]  ;;  %v441_v11 = vld [vmem:[#allocation2 + $0x450] sm:$0xff] }
  0x51   :  { %383 = vmatpush.msrb.mxu3 %v309_v7  ;;  %402 = vmatpush.msra.mxu0 %v280_v13  ;;  %v443_v7 = vld [vmem:[#allocation2 + $0x460] sm:$0xff]  ;;  %v442_v13 = vld [vmem:[#allocation2 + $0x458] sm:$0xff] }
  0x52   :  { %422 = vmatpush.msra.mxu1 %v312_v5  ;;  %v446_v5 = vld [vmem:[#allocation2 + $0x478] sm:$0xff] }
  0x53   :  { %403 = vmatpush.msra.mxu0 %v278_v15  ;;  %v439_v15 = vld [vmem:[#allocation2 + $0x440] sm:$0xff] }
  0x54   :  { %423 = vmatpush.msra.mxu1 %v310_v9  ;;  %v444_v9 = vld [vmem:[#allocation2 + $0x468] sm:$0xff] }
  0x91   :  { %v101_v46 = vpop.f32.mrf.mxu0 }
  0x92   :  { %v121_v47 = vpop.f32.mrf.mxu1  ;;  %v102_v48 = vadd.f32 %v101_v46, %v76_v44  ;;  %v190_v44 = vperm.slane %v188_v34, 0  ;;  %v701_v34 = vld [vmem:[#allocation5 + $0x3a8] sm:$0xff] }
  0x93   :  { %v122_v49 = vadd.f32 %v121_v47, %v77_v45 }
  0x94   :  { %210 = vmatmul.f32.vlgmr.msra.gmra.mxu2 %v102_v48  ;;  %250 = vmatmul.f32.vlgmr.msrb.gmra.mxu0 %v102_v48 }
  0x95   :  { %230 = vmatmul.f32.vlgmr.msra.gmra.mxu3 %v122_v49  ;;  %270 = vmatmul.f32.vlgmr.msrb.gmra.mxu1 %v122_v49 }
  0x96   :  { %522 = vmatpush.msra.mxu3 %v493_v16  ;;  %562 = vmatpush.msrb.mxu1 %v494_v17  ;;  %v465_v16 = vld [vmem:[#allocation2 + $0x510] sm:$0xff]  ;;  %v440_v17 = vld [vmem:[#allocation2 + $0x448] sm:$0xff] }
  0x97   :  { %502 = vmatpush.msra.mxu2 %v461_v22  ;;  %542 = vmatpush.msrb.mxu0 %v462_v23  ;;  %v464_v22 = vld [vmem:[#allocation2 + $0x508] sm:$0xff]  ;;  %v435_v23 = vld [vmem:[#allocation2 + $0x420] sm:$0xff] }
  0x98   :  { %523 = vmatpush.msra.mxu3 %v491_v18  ;;  %563 = vmatpush.msrb.mxu1 %v492_v19  ;;  %v466_v18 = vld [vmem:[#allocation2 + $0x518] sm:$0xff]  ;;  %v437_v19 = vld [vmem:[#allocation2 + $0x430] sm:$0xff] }
  0x99   :  { %503 = vmatpush.msra.mxu2 %v459_v24  ;;  %543 = vmatpush.msrb.mxu0 %v460_v27  ;;  %v436_v24 = vld [vmem:[#allocation2 + $0x428] sm:$0xff]  ;;  %v431_v27 = vld [vmem:[#allocation2 + $0x400] sm:$0xff] }
  0x9a   :  { %524 = vmatpush.msra.mxu3 %v489_v20  ;;  %564 = vmatpush.msrb.mxu1 %v490_v21  ;;  %v463_v20 = vld [vmem:[#allocation2 + $0x500] sm:$0xff]  ;;  %v438_v21 = vld [vmem:[#allocation2 + $0x438] sm:$0xff] }
  0x9b   :  { %504 = vmatpush.msra.mxu2 %v457_v28  ;;  %544 = vmatpush.msrb.mxu0 %v458_v29  ;;  %v432_v28 = vld [vmem:[#allocation2 + $0x408] sm:$0xff]  ;;  %v708_v29 = vld [vmem:[#allocation5 + $0x3e0] sm:$0xff] }
  0x9c   :  { %525 = vmatpush.msra.mxu3 %v487_v25  ;;  %565 = vmatpush.msrb.mxu1 %v488_v26  ;;  %v433_v25 = vld [vmem:[#allocation2 + $0x410] sm:$0xff]  ;;  %v434_v26 = vld [vmem:[#allocation2 + $0x418] sm:$0xff] }
  0x9d   :  { %505 = vmatpush.msra.mxu2 %v455_v32  ;;  %545 = vmatpush.msrb.mxu0 %v456_v33  ;;  %v705_v32 = vld [vmem:[#allocation5 + $0x3c8] sm:$0xff]  ;;  %v700_v33 = vld [vmem:[#allocation5 + $0x3a0] sm:$0xff] }
  0x9e   :  { %526 = vmatpush.msra.mxu3 %v485_v30  ;;  %566 = vmatpush.msrb.mxu1 %v486_v31  ;;  %v709_v30 = vld [vmem:[#allocation5 + $0x3e8] sm:$0xff]  ;;  %v704_v31 = vld [vmem:[#allocation5 + $0x3c0] sm:$0xff] }
  0x9f   :  { %506 = vmatpush.msra.mxu2 %v453_v51  ;;  %546 = vmatpush.msrb.mxu0 %v454_v53  ;;  %v629_v51 = vld [vmem:[#allocation5 + $0x168] sm:$0xff] }
  0xa0   :  { %527 = vmatpush.msra.mxu3 %v483_v35  ;;  %567 = vmatpush.msrb.mxu1 %v484_v36  ;;  %v644_v35 = vld [vmem:[#allocation5 + $0x1e0] sm:$0xff]  ;;  %v645_v36 = vld [vmem:[#allocation5 + $0x1e8] sm:$0xff] }
  0xa1   :  { %507 = vmatpush.msra.mxu2 %v451_v55  ;;  %547 = vmatpush.msrb.mxu0 %v452_v57  ;;  %v685_v53 = vld [vmem:[#allocation5 + $0x328] sm:$0xff]  ;;  %v624_v55 = vld [vmem:[#allocation5 + $0x140] sm:$0xff] }
  0xa2   :  { %528 = vmatpush.msra.mxu3 %v481_v37  ;;  %568 = vmatpush.msrb.mxu1 %v482_v38  ;;  %v640_v37 = vld [vmem:[#allocation5 + $0x1c0] sm:$0xff] }
  0xa3   :  { %508 = vmatpush.msra.mxu2 %v449_v59  ;;  %548 = vmatpush.msrb.mxu0 %v450_v61  ;;  %v696_v38 = vld [vmem:[#allocation5 + $0x380] sm:$0xff] }
  0xa4   :  { %529 = vmatpush.msra.mxu3 %v479_v52  ;;  %569 = vmatpush.msrb.mxu1 %v480_v54  ;;  %v684_v52 = vld [vmem:[#allocation5 + $0x320] sm:$0xff] }
  0xa5   :  { %509 = vmatpush.msra.mxu2 %v447_v63  ;;  %549 = vmatpush.msrb.mxu0 %v448_v1  ;;  %v680_v57 = vld [vmem:[#allocation5 + $0x300] sm:$0xff]  ;;  %v677_v63 = vld [vmem:[#allocation5 + $0x2e8] sm:$0xff] }
  0xa6   :  { %530 = vmatpush.msra.mxu3 %v477_v56  ;;  %570 = vmatpush.msrb.mxu1 %v478_v58  ;;  %v625_v56 = vld [vmem:[#allocation5 + $0x148] sm:$0xff]  ;;  %v620_v59 = vld [vmem:[#allocation5 + $0x120] sm:$0xff] }
  0xa7   :  { %510 = vmatpush.msra.mxu2 %v445_v3  ;;  %550 = vmatpush.msrb.mxu0 %v446_v5  ;;  %v681_v58 = vld [vmem:[#allocation5 + $0x308] sm:$0xff]  ;;  %v616_v1 = vld [vmem:[#allocation5 + $0x100] sm:$0xff] }
  0xa8   :  { %531 = vmatpush.msra.mxu3 %v475_v60  ;;  %571 = vmatpush.msrb.mxu1 %v476_v62  ;;  %v621_v60 = vld [vmem:[#allocation5 + $0x128] sm:$0xff]  ;;  %v676_v62 = vld [vmem:[#allocation5 + $0x2e0] sm:$0xff] }
  0xa9   :  { %511 = vmatpush.msra.mxu2 %v443_v7  ;;  %551 = vmatpush.msrb.mxu0 %v444_v9  ;;  %v673_v5 = vld [vmem:[#allocation5 + $0x2c8] sm:$0xff] }
  0xaa   :  { %532 = vmatpush.msra.mxu3 %v473_v0  ;;  %572 = vmatpush.msrb.mxu1 %v474_v2  ;;  %v617_v2 = vld [vmem:[#allocation5 + $0x108] sm:$0xff] }
  0xab   :  { %512 = vmatpush.msra.mxu2 %v441_v11  ;;  %552 = vmatpush.msrb.mxu0 %v442_v13  ;;  %v613_v9 = vld [vmem:[#allocation5 + $0xe8] sm:$0xff] }
  0xac   :  { %533 = vmatpush.msra.mxu3 %v471_v4  ;;  %573 = vmatpush.msrb.mxu1 %v472_v6  ;;  %v672_v4 = vld [vmem:[#allocation5 + $0x2c0] sm:$0xff]  ;;  %v669_v11 = vld [vmem:[#allocation5 + $0x2a8] sm:$0xff] }
  0xad   :  { %513 = vmatpush.msra.mxu2 %v439_v15  ;;  %553 = vmatpush.msrb.mxu0 %v440_v17  ;;  %v609_v13 = vld [vmem:[#allocation5 + $0xc8] sm:$0xff]  ;;  %v664_v15 = vld [vmem:[#allocation5 + $0x280] sm:$0xff] }
  0xae   :  { %534 = vmatpush.msra.mxu3 %v469_v8  ;;  %574 = vmatpush.msrb.mxu1 %v470_v10  ;;  %v612_v8 = vld [vmem:[#allocation5 + $0xe0] sm:$0xff] }
  0xaf   :  { %514 = vmatpush.msra.mxu2 %v437_v19  ;;  %554 = vmatpush.msrb.mxu0 %v438_v21  ;;  %v668_v10 = vld [vmem:[#allocation5 + $0x2a0] sm:$0xff]  ;;  %v605_v19 = vld [vmem:[#allocation5 + $0xa8] sm:$0xff] }
  0xb0   :  { %535 = vmatpush.msra.mxu3 %v467_v12  ;;  %575 = vmatpush.msrb.mxu1 %v468_v14  ;;  %v608_v12 = vld [vmem:[#allocation5 + $0xc0] sm:$0xff] }
  0xb1   :  { %515 = vmatpush.msra.mxu2 %v435_v23  ;;  %555 = vmatpush.msrb.mxu0 %v436_v24  ;;  %v660_v21 = vld [vmem:[#allocation5 + $0x260] sm:$0xff] }
  0xb2   :  { %536 = vmatpush.msra.mxu3 %v465_v16  ;;  %576 = vmatpush.msrb.mxu1 %v466_v18  ;;  %v665_v16 = vld [vmem:[#allocation5 + $0x288] sm:$0xff]  ;;  %v604_v18 = vld [vmem:[#allocation5 + $0xa0] sm:$0xff] }
  0xb3   :  { %516 = vmatpush.msra.mxu2 %v433_v25  ;;  %556 = vmatpush.msrb.mxu0 %v434_v26  ;;  %v656_v24 = vld [vmem:[#allocation5 + $0x240] sm:$0xff]  ;;  %v657_v25 = vld [vmem:[#allocation5 + $0x248] sm:$0xff] }
  0xb4   :  { %537 = vmatpush.msra.mxu3 %v463_v20  ;;  %577 = vmatpush.msrb.mxu1 %v464_v22  ;;  %v661_v22 = vld [vmem:[#allocation5 + $0x268] sm:$0xff] }
  0xb5   :  { %517 = vmatpush.msra.mxu2 %v431_v27  ;;  %557 = vmatpush.msrb.mxu0 %v432_v28  ;;  %v600_v27 = vld [vmem:[#allocation5 + $0x80] sm:$0xff]  ;;  %v601_v28 = vld [vmem:[#allocation5 + $0x88] sm:$0xff] }
 0x111   :  { %v251_v40 = vpop.f32.mrf.mxu0 }
 0x112   :  { %v252_v41 = vadd.f32 %v251_v40, %v191_v39  ;;  %v271_v42 = vpop.f32.mrf.mxu1  ;;  %v697_v39 = vld [vmem:[#allocation5 + $0x388] sm:$0xff] }
 0x113   :  { %v641_v40 = vld [vmem:[#allocation5 + $0x1c8] sm:$0xff] }
 0x114   :  { %v272_v43 = vadd.f32 %v271_v42, %v252_v41  ;;  %v636_v41 = vld [vmem:[#allocation5 + $0x1a0] sm:$0xff]  ;;  %v637_v42 = vld [vmem:[#allocation5 + $0x1a8] sm:$0xff] }
 0x116   :  { %1066 = vtanh.f32 %v272_v43  ;;  %v692_v43 = vld [vmem:[#allocation5 + $0x360] sm:$0xff] }
 0x117   :  { %v211_v45 = vpop.f32.mrf.mxu2 }
 0x118   :  { %v212_v46 = vadd.f32 %v211_v45, %v190_v44  ;;  %v231_v47 = vpop.f32.mrf.mxu3  ;;  %v693_v44 = vld [vmem:[#allocation5 + $0x368] sm:$0xff]  ;;  %v632_v45 = vld [vmem:[#allocation5 + $0x180] sm:$0xff] }
 0x11a   :  { %v232_v48 = vadd.f32 %v231_v47, %v212_v46  ;;  %v633_v46 = vld [vmem:[#allocation5 + $0x188] sm:$0xff]  ;;  %v1056_v47 = vld [vmem:[%s1471_s4 + $0x2] sm:$0x3] }
 0x11b   :  { %v345_v54 = vperm.slane %v1056_v47, 1  ;;  %v344_v7 = vperm.slane %v1056_v47, 0  ;;  %v585_v47 = vld [vmem:[#allocation5 + $0x8] sm:$0xff] }
 0x11c   :  { %v1067_v49 = vpop.eup %1066  ;;  %1068 = vtanh.f32 %v232_v48  ;;  %v688_v48 = vld [vmem:[#allocation5 + $0x340] sm:$0xff] }
 0x11d   :  { %384 = vmatmul.f32.vlgmr.msrb.gmra.mxu3 %v1067_v49  ;;  %424 = vmatmul.f32.vlgmr.msra.gmra.mxu1 %v1067_v49  ;;  %v689_v49 = vld [vmem:[#allocation5 + $0x348] sm:$0xff] }
 0x11e   :  { %742 = vmatpush.msrb.mxu3 %v708_v29  ;;  %782 = vmatpush.msra.mxu1 %v709_v30  ;;  %v652_v29 = vld [vmem:[#allocation5 + $0x220] sm:$0xff]  ;;  %v653_v30 = vld [vmem:[#allocation5 + $0x228] sm:$0xff] }
 0x120   :  { %743 = vmatpush.msrb.mxu3 %v704_v31  ;;  %783 = vmatpush.msra.mxu1 %v705_v32  ;;  %v596_v31 = vld [vmem:[#allocation5 + $0x60] sm:$0xff]  ;;  %v597_v32 = vld [vmem:[#allocation5 + $0x68] sm:$0xff] }
 0x122   :  { %v1069_v50 = vpop.eup %1068  ;;  %744 = vmatpush.msrb.mxu3 %v700_v33  ;;  %784 = vmatpush.msra.mxu1 %v701_v34  ;;  %v648_v33 = vld [vmem:[#allocation5 + $0x200] sm:$0xff]  ;;  %v649_v34 = vld [vmem:[#allocation5 + $0x208] sm:$0xff] }
 0x123   :  { %364 = vmatmul.f32.vlgmr.msrb.gmra.mxu2 %v1069_v50  ;;  %404 = vmatmul.f32.vlgmr.msra.gmra.mxu0 %v1069_v50  ;;  %v628_v50 = vld [vmem:[#allocation5 + $0x160] sm:$0xff] }
 0x124   :  { %722 = vmatpush.msrb.mxu2 %v644_v35  ;;  %762 = vmatpush.msra.mxu0 %v645_v36  ;;  %v710_v35 = vld [vmem:[#allocation5 + $0x3f0] sm:$0xff]  ;;  %v711_v36 = vld [vmem:[#allocation5 + $0x3f8] sm:$0xff] }
 0x125   :  { %745 = vmatpush.msrb.mxu3 %v696_v38  ;;  %785 = vmatpush.msra.mxu1 %v697_v39  ;;  %v592_v38 = vld [vmem:[#allocation5 + $0x40] sm:$0xff]  ;;  %v593_v39 = vld [vmem:[#allocation5 + $0x48] sm:$0xff] }
 0x126   :  { %723 = vmatpush.msrb.mxu2 %v640_v37  ;;  %763 = vmatpush.msra.mxu0 %v641_v40  ;;  %v706_v40 = vld [vmem:[#allocation5 + $0x3d0] sm:$0xff] }
 0x127   :  { %746 = vmatpush.msrb.mxu3 %v692_v43  ;;  %786 = vmatpush.msra.mxu1 %v693_v44  ;;  %v589_v43 = vld [vmem:[#allocation5 + $0x28] sm:$0xff]  ;;  %v702_v44 = vld [vmem:[#allocation5 + $0x3b0] sm:$0xff] }
 0x128   :  { %724 = vmatpush.msrb.mxu2 %v636_v41  ;;  %764 = vmatpush.msra.mxu0 %v637_v42  ;;  %v707_v41 = vld [vmem:[#allocation5 + $0x3d8] sm:$0xff]  ;;  %v588_v42 = vld [vmem:[#allocation5 + $0x20] sm:$0xff] }
 0x129   :  { %747 = vmatpush.msrb.mxu3 %v688_v48  ;;  %787 = vmatpush.msra.mxu1 %v689_v49  ;;  %v646_v48 = vld [vmem:[#allocation5 + $0x1f0] sm:$0xff] }
 0x12a   :  { %725 = vmatpush.msrb.mxu2 %v632_v45  ;;  %765 = vmatpush.msra.mxu0 %v633_v46  ;;  %v703_v45 = vld [vmem:[#allocation5 + $0x3b8] sm:$0xff]  ;;  %v584_v46 = vld [vmem:[#allocation5] sm:$0xff]  ;;  %v698_v49 = vld [vmem:[#allocation5 + $0x390] sm:$0xff] }
 0x12b   :  { %748 = vmatpush.msrb.mxu3 %v684_v52  ;;  %788 = vmatpush.msra.mxu1 %v685_v53  ;;  %v642_v52 = vld [vmem:[#allocation5 + $0x1d0] sm:$0xff] }
 0x12c   :  { %726 = vmatpush.msrb.mxu2 %v628_v50  ;;  %766 = vmatpush.msra.mxu0 %v629_v51  ;;  %v647_v50 = vld [vmem:[#allocation5 + $0x1f8] sm:$0xff]  ;;  %v694_v53 = vld [vmem:[#allocation5 + $0x370] sm:$0xff] }
 0x12d   :  { %749 = vmatpush.msrb.mxu3 %v680_v57  ;;  %789 = vmatpush.msra.mxu1 %v681_v58  ;;  %v699_v51 = vld [vmem:[#allocation5 + $0x398] sm:$0xff]  ;;  %v690_v57 = vld [vmem:[#allocation5 + $0x350] sm:$0xff] }
 0x12e   :  { %727 = vmatpush.msrb.mxu2 %v624_v55  ;;  %767 = vmatpush.msra.mxu0 %v625_v56  ;;  %v695_v55 = vld [vmem:[#allocation5 + $0x378] sm:$0xff]  ;;  %v638_v56 = vld [vmem:[#allocation5 + $0x1b0] sm:$0xff] }
 0x12f   :  { %750 = vmatpush.msrb.mxu3 %v676_v62  ;;  %790 = vmatpush.msra.mxu1 %v677_v63  ;;  %v639_v58 = vld [vmem:[#allocation5 + $0x1b8] sm:$0xff] }
 0x130   :  { %728 = vmatpush.msrb.mxu2 %v620_v59  ;;  %768 = vmatpush.msra.mxu0 %v621_v60  ;;  %v691_v59 = vld [vmem:[#allocation5 + $0x358] sm:$0xff]  ;;  %v634_v60 = vld [vmem:[#allocation5 + $0x190] sm:$0xff] }
 0x131   :  { %751 = vmatpush.msrb.mxu3 %v672_v4  ;;  %791 = vmatpush.msra.mxu1 %v673_v5  ;;  %v635_v62 = vld [vmem:[#allocation5 + $0x198] sm:$0xff]  ;;  %v626_v4 = vld [vmem:[#allocation5 + $0x150] sm:$0xff] }
 0x132   :  { %729 = vmatpush.msrb.mxu2 %v616_v1  ;;  %769 = vmatpush.msra.mxu0 %v617_v2  ;;  %v687_v63 = vld [vmem:[#allocation5 + $0x338] sm:$0xff]  ;;  %v682_v1 = vld [vmem:[#allocation5 + $0x310] sm:$0xff] }
 0x133   :  { %752 = vmatpush.msrb.mxu3 %v668_v10  ;;  %792 = vmatpush.msra.mxu1 %v669_v11  ;;  %v631_v2 = vld [vmem:[#allocation5 + $0x178] sm:$0xff]  ;;  %v678_v5 = vld [vmem:[#allocation5 + $0x2f0] sm:$0xff] }
 0x134   :  { %730 = vmatpush.msrb.mxu2 %v612_v8  ;;  %770 = vmatpush.msra.mxu0 %v613_v9  ;;  %v622_v8 = vld [vmem:[#allocation5 + $0x130] sm:$0xff]  ;;  %v623_v10 = vld [vmem:[#allocation5 + $0x138] sm:$0xff] }
 0x135   :  { %753 = vmatpush.msrb.mxu3 %v664_v15  ;;  %793 = vmatpush.msra.mxu1 %v665_v16  ;;  %v674_v9 = vld [vmem:[#allocation5 + $0x2d0] sm:$0xff]  ;;  %v675_v11 = vld [vmem:[#allocation5 + $0x2d8] sm:$0xff] }
 0x136   :  { %731 = vmatpush.msrb.mxu2 %v608_v12  ;;  %771 = vmatpush.msra.mxu0 %v609_v13  ;;  %v618_v12 = vld [vmem:[#allocation5 + $0x110] sm:$0xff]  ;;  %v671_v15 = vld [vmem:[#allocation5 + $0x2b8] sm:$0xff] }
 0x137   :  { %754 = vmatpush.msrb.mxu3 %v660_v21  ;;  %794 = vmatpush.msra.mxu1 %v661_v22  ;;  %v670_v13 = vld [vmem:[#allocation5 + $0x2b0] sm:$0xff]  ;;  %v611_v22 = vld [vmem:[#allocation5 + $0xd8] sm:$0xff] }
 0x138   :  { %732 = vmatpush.msrb.mxu2 %v604_v18  ;;  %772 = vmatpush.msra.mxu0 %v605_v19  ;;  %v614_v16 = vld [vmem:[#allocation5 + $0xf0] sm:$0xff]  ;;  %v615_v18 = vld [vmem:[#allocation5 + $0xf8] sm:$0xff] }
 0x139   :  { %755 = vmatpush.msrb.mxu3 %v656_v24  ;;  %795 = vmatpush.msra.mxu1 %v657_v25  ;;  %v667_v19 = vld [vmem:[#allocation5 + $0x298] sm:$0xff]  ;;  %v662_v21 = vld [vmem:[#allocation5 + $0x270] sm:$0xff] }
 0x13a   :  { %733 = vmatpush.msrb.mxu2 %v600_v27  ;;  %773 = vmatpush.msra.mxu0 %v601_v28  ;;  %v606_v24 = vld [vmem:[#allocation5 + $0xb0] sm:$0xff]  ;;  %v659_v27 = vld [vmem:[#allocation5 + $0x258] sm:$0xff] }
 0x13b   :  { %756 = vmatpush.msrb.mxu3 %v652_v29  ;;  %796 = vmatpush.msra.mxu1 %v653_v30  ;;  %v658_v25 = vld [vmem:[#allocation5 + $0x250] sm:$0xff]  ;;  %v603_v30 = vld [vmem:[#allocation5 + $0x98] sm:$0xff] }
 0x13c   :  { %734 = vmatpush.msrb.mxu2 %v596_v31  ;;  %774 = vmatpush.msra.mxu0 %v597_v32  ;;  %v602_v28 = vld [vmem:[#allocation5 + $0x90] sm:$0xff]  ;;  %v655_v31 = vld [vmem:[#allocation5 + $0x238] sm:$0xff] }
 0x13d   :  { %757 = vmatpush.msrb.mxu3 %v648_v33  ;;  %797 = vmatpush.msra.mxu1 %v649_v34  ;;  %v654_v29 = vld [vmem:[#allocation5 + $0x230] sm:$0xff]  ;;  %v599_v34 = vld [vmem:[#allocation5 + $0x78] sm:$0xff] }
 0x13e   :  { %735 = vmatpush.msrb.mxu2 %v592_v38  ;;  %775 = vmatpush.msra.mxu0 %v593_v39  ;;  %v598_v32 = vld [vmem:[#allocation5 + $0x70] sm:$0xff]  ;;  %v591_v39 = vld [vmem:[#allocation5 + $0x38] sm:$0xff] }
 0x13f   :  { %v650_v33 = vld [vmem:[#allocation5 + $0x210] sm:$0xff] }
 0x140   :  { %736 = vmatpush.msrb.mxu2 %v588_v42  ;;  %776 = vmatpush.msra.mxu0 %v589_v43  ;;  %v590_v38 = vld [vmem:[#allocation5 + $0x30] sm:$0xff]  ;;  %v1057_v42 = vld [vmem:[%s1471_s4 + $0x4] sm:$0x3] }
 0x141   :  { %v499_v43 = vperm.slane %v1057_v42, 1 }
 0x142   :  { %737 = vmatpush.msrb.mxu2 %v584_v46  ;;  %777 = vmatpush.msra.mxu0 %v585_v47 }
 0x19a   :  { %v425_v3 = vpop.f32.mrf.mxu1 }
 0x1a0   :  { %v405_v61 = vpop.f32.mrf.mxu0  ;;  %v385_v20 = vpop.f32.mrf.mxu3 }
 0x1a1   :  { %v406_v0 = vadd.f32 %v405_v61, %v345_v54  ;;  %v643_v54 = vld [vmem:[#allocation5 + $0x1d8] sm:$0xff]  ;;  %v686_v61 = vld [vmem:[#allocation5 + $0x330] sm:$0xff] }
 0x1a3   :  { %v426_v6 = vadd.f32 %v425_v3, %v406_v0  ;;  %v630_v0 = vld [vmem:[#allocation5 + $0x170] sm:$0xff]  ;;  %v683_v3 = vld [vmem:[#allocation5 + $0x318] sm:$0xff] }
 0x1a5   :  { %1070 = vtanh.f32 %v426_v6  ;;  %v627_v6 = vld [vmem:[#allocation5 + $0x158] sm:$0xff] }
 0x1a6   :  { %v365_v14 = vpop.f32.mrf.mxu2 }
 0x1a7   :  { %v366_v17 = vadd.f32 %v365_v14, %v344_v7  ;;  %v679_v7 = vld [vmem:[#allocation5 + $0x2f8] sm:$0xff] }
 0x1a8   :  { %v619_v14 = vld [vmem:[#allocation5 + $0x118] sm:$0xff] }
 0x1a9   :  { %v386_v23 = vadd.f32 %v385_v20, %v366_v17  ;;  %v666_v17 = vld [vmem:[#allocation5 + $0x290] sm:$0xff] }
 0x1aa   :  { %v610_v20 = vld [vmem:[#allocation5 + $0xd0] sm:$0xff] }
 0x1ab   :  { %v1071_v26 = vpop.eup %1070  ;;  %1072 = vtanh.f32 %v386_v23  ;;  %v663_v23 = vld [vmem:[#allocation5 + $0x278] sm:$0xff] }
 0x1ac   :  { %538 = vmatmul.f32.vlgmr.msra.gmra.mxu3 %v1071_v26  ;;  %578 = vmatmul.f32.vlgmr.msrb.gmra.mxu1 %v1071_v26  ;;  %v607_v26 = vld [vmem:[#allocation5 + $0xb8] sm:$0xff] }
 0x1ad   :  { %822 = vmatpush.msra.mxu3 %v710_v35  ;;  %862 = vmatpush.msrb.mxu1 %v711_v36  ;;  %v651_v35 = vld [vmem:[#allocation5 + $0x218] sm:$0xff]  ;;  %v594_v36 = vld [vmem:[#allocation5 + $0x50] sm:$0xff] }
 0x1af   :  { %823 = vmatpush.msra.mxu3 %v706_v40  ;;  %863 = vmatpush.msrb.mxu1 %v707_v41  ;;  %v586_v40 = vld [vmem:[#allocation5 + $0x10] sm:$0xff]  ;;  %v587_v41 = vld [vmem:[#allocation5 + $0x18] sm:$0xff] }
 0x1b1   :  { %v1073_v37 = vpop.eup %1072  ;;  %824 = vmatpush.msra.mxu3 %v702_v44  ;;  %864 = vmatpush.msrb.mxu1 %v703_v45 }
 0x1b2   :  { %518 = vmatmul.f32.vlgmr.msra.gmra.mxu2 %v1073_v37  ;;  %558 = vmatmul.f32.vlgmr.msrb.gmra.mxu0 %v1073_v37  ;;  %v595_v37 = vld [vmem:[#allocation5 + $0x58] sm:$0xff] }
 0x1b3   :  { %802 = vmatpush.msra.mxu2 %v646_v48  ;;  %825 = vmatpush.msra.mxu3 %v698_v49  ;;  %v498_v48 = vperm.slane %v1057_v42, 0  ;;  %v924_v42 = vld [vmem:[%s1474_s7 + $0x130] sm:$0xff] }
 0x1b4   :  { %842 = vmatpush.msrb.mxu0 %v647_v50  ;;  %865 = vmatpush.msrb.mxu1 %v699_v51 }
 0x1b5   :  { %803 = vmatpush.msra.mxu2 %v642_v52  ;;  %826 = vmatpush.msra.mxu3 %v694_v53  ;;  %v917_v53 = vld [vmem:[%s1474_s7 + $0xf8] sm:$0xff] }
 0x1b6   :  { %843 = vmatpush.msrb.mxu0 %v643_v54  ;;  %866 = vmatpush.msrb.mxu1 %v695_v55  ;;  %v949_v54 = vld [vmem:[%s1474_s7 + $0x1f8] sm:$0xff] }
 0x1b7   :  { %804 = vmatpush.msra.mxu2 %v638_v56  ;;  %827 = vmatpush.msra.mxu3 %v690_v57  ;;  %v916_v56 = vld [vmem:[%s1474_s7 + $0xf0] sm:$0xff] }
 0x1b8   :  { %844 = vmatpush.msrb.mxu0 %v639_v58  ;;  %867 = vmatpush.msrb.mxu1 %v691_v59  ;;  %v948_v57 = vld [vmem:[%s1474_s7 + $0x1f0] sm:$0xff]  ;;  %v915_v58 = vld [vmem:[%s1474_s7 + $0xe8] sm:$0xff] }
 0x1b9   :  { %805 = vmatpush.msra.mxu2 %v634_v60  ;;  %828 = vmatpush.msra.mxu3 %v686_v61  ;;  %v947_v59 = vld [vmem:[%s1474_s7 + $0x1e8] sm:$0xff]  ;;  %v901_v60 = vld [vmem:[%s1474_s7 + $0x78] sm:$0xff]  ;;  %v914_v61 = vld [vmem:[%s1474_s7 + $0xe0] sm:$0xff] }
 0x1ba   :  { %845 = vmatpush.msrb.mxu0 %v635_v62  ;;  %868 = vmatpush.msrb.mxu1 %v687_v63  ;;  %v900_v63 = vld [vmem:[%s1474_s7 + $0x70] sm:$0xff] }
 0x1bb   :  { %806 = vmatpush.msra.mxu2 %v630_v0  ;;  %829 = vmatpush.msra.mxu3 %v682_v1  ;;  %v913_v0 = vld [vmem:[%s1474_s7 + $0xd8] sm:$0xff]  ;;  %v899_v1 = vld [vmem:[%s1474_s7 + $0x68] sm:$0xff] }
 0x1bc   :  { %846 = vmatpush.msrb.mxu0 %v631_v2  ;;  %869 = vmatpush.msrb.mxu1 %v683_v3  ;;  %v912_v2 = vld [vmem:[%s1474_s7 + $0xd0] sm:$0xff]  ;;  %v898_v3 = vld [vmem:[%s1474_s7 + $0x60] sm:$0xff] }
 0x1bd   :  { %807 = vmatpush.msra.mxu2 %v626_v4  ;;  %830 = vmatpush.msra.mxu3 %v678_v5  ;;  %v911_v4 = vld [vmem:[%s1474_s7 + $0xc8] sm:$0xff]  ;;  %v897_v5 = vld [vmem:[%s1474_s7 + $0x58] sm:$0xff] }
 0x1be   :  { %847 = vmatpush.msrb.mxu0 %v627_v6  ;;  %870 = vmatpush.msrb.mxu1 %v679_v7  ;;  %v910_v6 = vld [vmem:[%s1474_s7 + $0xc0] sm:$0xff]  ;;  %v933_v7 = vld [vmem:[%s1474_s7 + $0x178] sm:$0xff] }
 0x1bf   :  { %808 = vmatpush.msra.mxu2 %v622_v8  ;;  %831 = vmatpush.msra.mxu3 %v674_v9  ;;  %v946_v8 = vld [vmem:[%s1474_s7 + $0x1e0] sm:$0xff]  ;;  %v896_v9 = vld [vmem:[%s1474_s7 + $0x50] sm:$0xff] }
 0x1c0   :  { %848 = vmatpush.msrb.mxu0 %v623_v10  ;;  %871 = vmatpush.msrb.mxu1 %v675_v11  ;;  %v909_v10 = vld [vmem:[%s1474_s7 + $0xb8] sm:$0xff]  ;;  %v932_v11 = vld [vmem:[%s1474_s7 + $0x170] sm:$0xff] }
 0x1c1   :  { %809 = vmatpush.msra.mxu2 %v618_v12  ;;  %832 = vmatpush.msra.mxu3 %v670_v13  ;;  %v945_v12 = vld [vmem:[%s1474_s7 + $0x1d8] sm:$0xff]  ;;  %v895_v13 = vld [vmem:[%s1474_s7 + $0x48] sm:$0xff] }
 0x1c2   :  { %849 = vmatpush.msrb.mxu0 %v619_v14  ;;  %872 = vmatpush.msrb.mxu1 %v671_v15  ;;  %v908_v14 = vld [vmem:[%s1474_s7 + $0xb0] sm:$0xff]  ;;  %v931_v15 = vld [vmem:[%s1474_s7 + $0x168] sm:$0xff] }
 0x1c3   :  { %810 = vmatpush.msra.mxu2 %v614_v16  ;;  %833 = vmatpush.msra.mxu3 %v666_v17  ;;  %v944_v16 = vld [vmem:[%s1474_s7 + $0x1d0] sm:$0xff]  ;;  %v894_v17 = vld [vmem:[%s1474_s7 + $0x40] sm:$0xff] }
 0x1c4   :  { %850 = vmatpush.msrb.mxu0 %v615_v18  ;;  %873 = vmatpush.msrb.mxu1 %v667_v19  ;;  %v907_v18 = vld [vmem:[%s1474_s7 + $0xa8] sm:$0xff]  ;;  %v930_v19 = vld [vmem:[%s1474_s7 + $0x160] sm:$0xff] }
 0x1c5   :  { %811 = vmatpush.msra.mxu2 %v610_v20  ;;  %834 = vmatpush.msra.mxu3 %v662_v21  ;;  %v943_v20 = vld [vmem:[%s1474_s7 + $0x1c8] sm:$0xff]  ;;  %v893_v21 = vld [vmem:[%s1474_s7 + $0x38] sm:$0xff] }
 0x1c6   :  { %851 = vmatpush.msrb.mxu0 %v611_v22  ;;  %874 = vmatpush.msrb.mxu1 %v663_v23  ;;  %v906_v22 = vld [vmem:[%s1474_s7 + $0xa0] sm:$0xff]  ;;  %v929_v23 = vld [vmem:[%s1474_s7 + $0x158] sm:$0xff] }
 0x1c7   :  { %812 = vmatpush.msra.mxu2 %v606_v24  ;;  %835 = vmatpush.msra.mxu3 %v658_v25  ;;  %v942_v24 = vld [vmem:[%s1474_s7 + $0x1c0] sm:$0xff]  ;;  %v892_v25 = vld [vmem:[%s1474_s7 + $0x30] sm:$0xff] }
 0x1c8   :  { %852 = vmatpush.msrb.mxu0 %v607_v26  ;;  %875 = vmatpush.msrb.mxu1 %v659_v27  ;;  %v905_v26 = vld [vmem:[%s1474_s7 + $0x98] sm:$0xff]  ;;  %v928_v27 = vld [vmem:[%s1474_s7 + $0x150] sm:$0xff] }
 0x1c9   :  { %813 = vmatpush.msra.mxu2 %v602_v28  ;;  %836 = vmatpush.msra.mxu3 %v654_v29  ;;  %v941_v28 = vld [vmem:[%s1474_s7 + $0x1b8] sm:$0xff]  ;;  %v891_v29 = vld [vmem:[%s1474_s7 + $0x28] sm:$0xff] }
 0x1ca   :  { %853 = vmatpush.msrb.mxu0 %v603_v30  ;;  %876 = vmatpush.msrb.mxu1 %v655_v31  ;;  %v904_v30 = vld [vmem:[%s1474_s7 + $0x90] sm:$0xff]  ;;  %v927_v31 = vld [vmem:[%s1474_s7 + $0x148] sm:$0xff] }
 0x1cb   :  { %814 = vmatpush.msra.mxu2 %v598_v32  ;;  %837 = vmatpush.msra.mxu3 %v650_v33  ;;  %v940_v32 = vld [vmem:[%s1474_s7 + $0x1b0] sm:$0xff]  ;;  %v890_v33 = vld [vmem:[%s1474_s7 + $0x20] sm:$0xff] }
 0x1cc   :  { %854 = vmatpush.msrb.mxu0 %v599_v34  ;;  %877 = vmatpush.msrb.mxu1 %v651_v35  ;;  %v903_v34 = vld [vmem:[%s1474_s7 + $0x88] sm:$0xff]  ;;  %v926_v35 = vld [vmem:[%s1474_s7 + $0x140] sm:$0xff] }
 0x1cd   :  { %815 = vmatpush.msra.mxu2 %v594_v36  ;;  %v939_v36 = vld [vmem:[%s1474_s7 + $0x1a8] sm:$0xff] }
 0x1ce   :  { %855 = vmatpush.msrb.mxu0 %v595_v37  ;;  %v889_v37 = vld [vmem:[%s1474_s7 + $0x18] sm:$0xff] }
 0x1cf   :  { %816 = vmatpush.msra.mxu2 %v590_v38  ;;  %v902_v38 = vld [vmem:[%s1474_s7 + $0x80] sm:$0xff] }
 0x1d0   :  { %856 = vmatpush.msrb.mxu0 %v591_v39  ;;  %v925_v39 = vld [vmem:[%s1474_s7 + $0x138] sm:$0xff] }
 0x1d1   :  { %817 = vmatpush.msra.mxu2 %v586_v40  ;;  %v938_v40 = vld [vmem:[%s1474_s7 + $0x1a0] sm:$0xff] }
 0x1d2   :  { %857 = vmatpush.msrb.mxu0 %v587_v41  ;;  %v888_v41 = vld [vmem:[%s1474_s7 + $0x10] sm:$0xff] }
 0x229   :  { %v579_v46 = vpop.f32.mrf.mxu1 }
 0x22f   :  { %v559_v44 = vpop.f32.mrf.mxu0  ;;  %v539_v51 = vpop.f32.mrf.mxu3 }
 0x230   :  { %v560_v45 = vadd.f32 %v559_v44, %v499_v43  ;;  %v937_v43 = vld [vmem:[%s1474_s7 + $0x198] sm:$0xff]  ;;  %v887_v44 = vld [vmem:[%s1474_s7 + $0x8] sm:$0xff] }
 0x232   :  { %v580_v47 = vadd.f32 %v579_v46, %v560_v45  ;;  %v923_v45 = vld [vmem:[%s1474_s7 + $0x128] sm:$0xff]  ;;  %v936_v46 = vld [vmem:[%s1474_s7 + $0x190] sm:$0xff] }
 0x234   :  { %1074 = vtanh.f32 %v580_v47  ;;  %v886_v47 = vld [vmem:[%s1474_s7] sm:$0xff] }
 0x235   :  { %v519_v49 = vpop.f32.mrf.mxu2 }
 0x236   :  { %v520_v50 = vadd.f32 %v519_v49, %v498_v48  ;;  %v922_v48 = vld [vmem:[%s1474_s7 + $0x120] sm:$0xff]  ;;  %v935_v49 = vld [vmem:[%s1474_s7 + $0x188] sm:$0xff] }
 0x238   :  { %v540_v52 = vadd.f32 %v539_v51, %v520_v50  ;;  %v921_v50 = vld [vmem:[%s1474_s7 + $0x118] sm:$0xff]  ;;  %v934_v51 = vld [vmem:[%s1474_s7 + $0x180] sm:$0xff] }
 0x23a   :  { %v1075_v55 = vpop.eup %1074  ;;  %1076 = vtanh.f32 %v540_v52  ;;  %v920_v52 = vld [vmem:[%s1474_s7 + $0x110] sm:$0xff] }
 0x23b   :  { %758 = vmatmul.f32.vlgmr.msrb.gmra.mxu3 %v1075_v55  ;;  %798 = vmatmul.f32.vlgmr.msra.gmra.mxu1 %v1075_v55 }
 0x23c   :  { %974 = vmatpush.msrb.mxu3 %v917_v53  ;;  %1014 = vmatpush.msra.mxu1 %v949_v54  ;;  %v919_v53 = vld [vmem:[%s1474_s7 + $0x108] sm:$0xff]  ;;  %v918_v54 = vld [vmem:[%s1474_s7 + $0x100] sm:$0xff] }
 0x23e   :  { %975 = vmatpush.msrb.mxu3 %v916_v56  ;;  %1015 = vmatpush.msra.mxu1 %v948_v57 }
 0x240   :  { %v1077_v62 = vpop.eup %1076  ;;  %976 = vmatpush.msrb.mxu3 %v915_v58  ;;  %1016 = vmatpush.msra.mxu1 %v947_v59 }
 0x241   :  { %738 = vmatmul.f32.vlgmr.msrb.gmra.mxu2 %v1077_v62  ;;  %778 = vmatmul.f32.vlgmr.msra.gmra.mxu0 %v1077_v62 }
 0x242   :  { %954 = vmatpush.msrb.mxu2 %v901_v60  ;;  %977 = vmatpush.msrb.mxu3 %v914_v61 }
 0x243   :  { %838 = vmatmul.f32.vlgmr.msra.gmra.mxu3 %v1075_v55  ;;  %878 = vmatmul.f32.vlgmr.msrb.gmra.mxu1 %v1075_v55  ;;  %v712_v55 = vld [vmem:[%s1473_s6] sm:$0xf] }
 0x244   :  { %955 = vmatpush.msrb.mxu2 %v900_v63  ;;  %978 = vmatpush.msrb.mxu3 %v913_v0  ;;  %v715_v56 = vperm.slane %v712_v55, 1  ;;  %v714_v61 = vperm.slane %v712_v55, 0 }
 0x245   :  { %994 = vmatpush.msra.mxu0 %v933_v7  ;;  %1017 = vmatpush.msra.mxu1 %v946_v8  ;;  %v716_v8 = vperm.slane %v712_v55, 2 }
 0x246   :  { %956 = vmatpush.msrb.mxu2 %v899_v1  ;;  %979 = vmatpush.msrb.mxu3 %v912_v2 }
 0x247   :  { %995 = vmatpush.msra.mxu0 %v932_v11  ;;  %1018 = vmatpush.msra.mxu1 %v945_v12 }
 0x248   :  { %957 = vmatpush.msrb.mxu2 %v898_v3  ;;  %980 = vmatpush.msrb.mxu3 %v911_v4 }
 0x249   :  { %818 = vmatmul.f32.vlgmr.msra.gmra.mxu2 %v1077_v62  ;;  %858 = vmatmul.f32.vlgmr.msrb.gmra.mxu0 %v1077_v62  ;;  %v717_v62 = vperm.slane %v712_v55, 3 }
 0x24a   :  { %958 = vmatpush.msrb.mxu2 %v897_v5  ;;  %981 = vmatpush.msrb.mxu3 %v910_v6 }
 0x24b   :  { %996 = vmatpush.msra.mxu0 %v931_v15  ;;  %1019 = vmatpush.msra.mxu1 %v944_v16  ;;  %v1065_v16 = vld [vmem:[%s1475_s8] ss:$0 sm:$0xff] }
 0x24c   :  { %959 = vmatpush.msrb.mxu2 %v896_v9  ;;  %982 = vmatpush.msrb.mxu3 %v909_v10 }
 0x24d   :  { %997 = vmatpush.msra.mxu0 %v930_v19  ;;  %1020 = vmatpush.msra.mxu1 %v943_v20 }
 0x24e   :  { %960 = vmatpush.msrb.mxu2 %v895_v13  ;;  %983 = vmatpush.msrb.mxu3 %v908_v14 }
 0x24f   :  { %998 = vmatpush.msra.mxu0 %v929_v23  ;;  %1021 = vmatpush.msra.mxu1 %v942_v24 }
 0x250   :  { %961 = vmatpush.msrb.mxu2 %v894_v17  ;;  %984 = vmatpush.msrb.mxu3 %v907_v18 }
 0x251   :  { %999 = vmatpush.msra.mxu0 %v928_v27  ;;  %1022 = vmatpush.msra.mxu1 %v941_v28 }
 0x252   :  { %962 = vmatpush.msrb.mxu2 %v893_v21  ;;  %985 = vmatpush.msrb.mxu3 %v906_v22 }
 0x253   :  { %1000 = vmatpush.msra.mxu0 %v927_v31  ;;  %1023 = vmatpush.msra.mxu1 %v940_v32 }
 0x254   :  { %963 = vmatpush.msrb.mxu2 %v892_v25  ;;  %986 = vmatpush.msrb.mxu3 %v905_v26 }
 0x255   :  { %1001 = vmatpush.msra.mxu0 %v926_v35  ;;  %1024 = vmatpush.msra.mxu1 %v939_v36 }
 0x256   :  { %964 = vmatpush.msrb.mxu2 %v891_v29  ;;  %987 = vmatpush.msrb.mxu3 %v904_v30 }
 0x257   :  { %1002 = vmatpush.msra.mxu0 %v925_v39  ;;  %1025 = vmatpush.msra.mxu1 %v938_v40 }
 0x258   :  { %965 = vmatpush.msrb.mxu2 %v890_v33  ;;  %988 = vmatpush.msrb.mxu3 %v903_v34 }
 0x259   :  { %1003 = vmatpush.msra.mxu0 %v924_v42  ;;  %1026 = vmatpush.msra.mxu1 %v937_v43 }
 0x25a   :  { %966 = vmatpush.msrb.mxu2 %v889_v37  ;;  %989 = vmatpush.msrb.mxu3 %v902_v38 }
 0x25b   :  { %1004 = vmatpush.msra.mxu0 %v923_v45  ;;  %1027 = vmatpush.msra.mxu1 %v936_v46 }
 0x25c   :  { %967 = vmatpush.msrb.mxu2 %v888_v41 }
 0x25d   :  { %1005 = vmatpush.msra.mxu0 %v922_v48  ;;  %1028 = vmatpush.msra.mxu1 %v935_v49 }
 0x25e   :  { %968 = vmatpush.msrb.mxu2 %v887_v44 }
 0x25f   :  { %1006 = vmatpush.msra.mxu0 %v921_v50  ;;  %1029 = vmatpush.msra.mxu1 %v934_v51 }
 0x260   :  { %969 = vmatpush.msrb.mxu2 %v886_v47 }
 0x261   :  { %1007 = vmatpush.msra.mxu0 %v920_v52 }
 0x263   :  { %1008 = vmatpush.msra.mxu0 %v919_v53 }
 0x265   :  { %1009 = vmatpush.msra.mxu0 %v918_v54 }
 0x2b8   :  { %v799_v57 = vpop.f32.mrf.mxu1 }
 0x2be   :  { %v779_v58 = vpop.f32.mrf.mxu0  ;;  %v759_v63 = vpop.f32.mrf.mxu3 }
 0x2bf   :  { %v780_v59 = vadd.f32 %v779_v58, %v715_v56 }
 0x2c0   :  { %v879_v5 = vpop.f32.mrf.mxu1 }
 0x2c1   :  { %v800_v60 = vadd.f32 %v799_v57, %v780_v59 }
 0x2c3   :  { %1078 = vtanh.f32 %v800_v60 }
 0x2c4   :  { %v739_v0 = vpop.f32.mrf.mxu2 }
 0x2c5   :  { %v740_v1 = vadd.f32 %v739_v0, %v714_v61 }
 0x2c6   :  { %v859_v2 = vpop.f32.mrf.mxu0  ;;  %v839_v11 = vpop.f32.mrf.mxu3 }
 0x2c7   :  { %v760_v3 = vadd.f32 %v759_v63, %v740_v1  ;;  %v860_v4 = vadd.f32 %v859_v2, %v717_v62 }
 0x2c9   :  { %v1079_v6 = vpop.eup %1078  ;;  %1080 = vtanh.f32 %v760_v3  ;;  %v880_v7 = vadd.f32 %v879_v5, %v860_v4 }
 0x2ca   :  { %990 = vmatmul.f32.vlgmr.msrb.gmra.mxu3 %v1079_v6 }
 0x2cb   :  { %1082 = vtanh.f32 %v880_v7 }
 0x2cc   :  { %v819_v9 = vpop.f32.mrf.mxu2 }
 0x2cd   :  { %v820_v10 = vadd.f32 %v819_v9, %v716_v8 }
 0x2cf   :  { %v1081_v12 = vpop.eup %1080  ;;  %v840_v13 = vadd.f32 %v839_v11, %v820_v10 }
 0x2d0   :  { %970 = vmatmul.f32.vlgmr.msrb.gmra.mxu2 %v1081_v12 }
 0x2d1   :  { %v1083_v14 = vpop.eup %1082  ;;  %1084 = vtanh.f32 %v840_v13 }
 0x2d2   :  { %1030 = vmatmul.f32.vlgmr.msra.gmra.mxu1 %v1083_v14 }
 0x2d7   :  { %v1085_v15 = vpop.eup %1084 }
 0x2d8   :  { %1010 = vmatmul.f32.vlgmr.msra.gmra.mxu0 %v1085_v15 }
 0x34d   :  { %v991_v19 = vpop.f32.mrf.mxu3 }
 0x34f   :  { %v1031_v23 = vpop.f32.mrf.mxu1 }
 0x353   :  { %v971_v17 = vpop.f32.mrf.mxu2 }
 0x354   :  { %v972_v18 = vadd.f32 %v1065_v16, %v971_v17 }
 0x355   :  { %v1011_v21 = vpop.f32.mrf.mxu0 }
 0x356   :  { %v992_v20 = vadd.f32 %v991_v19, %v972_v18 }
 0x358   :  { %v1012_v22 = vadd.f32 %v1011_v21, %v992_v20 }
 0x35a   :  { %v1032_v24 = vadd.f32 %v1031_v23, %v1012_v22 }
 0x35c   :  { %1035 = vst.msk [vmem:[#allocation7] sm:$0x3] %vm1034_vm1, %v1032_v24 }
 0x35d   :  { %1046 = dma.vmem_to_hbm [thread:$0]  %s1042_s19, 32, %s1044_s22, [#allocation4]  }
 0x35e   :  { %1162 = dma.done.wait [#allocation4], 32  }
 0x35f   :  { %1163 = vsyncadd [#allocation4], 4294967264 }
 0x360   :  { %1051 = vsyncpa [#allocation3], 1 }
 0x361   :  { %1052 = vsyncpa [#allocation6], 1 }
 0x362   :  { %1053 = vsyncpa [#allocation4], 1 }

</bundles_post_ra>
